<compile_context>
chip_gen: v6e
topology: v6e:2x2x1
jax: 0.10.0
libtpu: 0.0.40
codegen_flags: <defaults>
</compile_context>

<pallas_src>
import math

import jax
import jax.numpy as jnp
from jax.experimental import pallas as pl
from jax.experimental.pallas import tpu as pltpu

EPS = 1e-5       # nn.LayerNorm default eps
BN_EPS = 1e-5    # nn.BatchNorm1d default eps
TM_MAX = 512     # row-tile cap (multiple of 256 -> full MXU passes on v6e/v7x)


def _round_up(v, m):
    return ((v + m - 1) // m) * m


# ---------------------------------------------------------------------------
# Fused LayerNorm + Linear (+ optional exact GELU) Pallas kernel.
# ---------------------------------------------------------------------------
# Abramowitz & Stegun 7.1.26 erf approximation, |error| <= 1.5e-7 (~f32 eps),
# built only from ops guaranteed to lower in Mosaic (exp / abs / where / FMA).
_ERF_P = 0.3275911
_ERF_A = (0.254829592, -0.284496736, 1.421413741, -1.453152027, 1.061405429)
_INV_SQRT2 = 0.7071067811865476


def _erf_f32(x):
    a = jnp.abs(x)
    t = 1.0 / (1.0 + _ERF_P * a)
    a1, a2, a3, a4, a5 = _ERF_A
    poly = t * (a1 + t * (a2 + t * (a3 + t * (a4 + t * a5))))
    e = 1.0 - poly * jnp.exp(-a * a)
    return jnp.where(x < 0.0, -e, e)


def _gelu_exact_f32(y):
    # nn.GELU() (exact erf form), evaluated in f32. exp lives on the EUP slot.
    return 0.5 * y * (1.0 + _erf_f32(y * _INV_SQRT2))


def _ln_linear_body(x_ref, g_ref, b_ref, w_ref, bias_ref, o_ref, fuse_gelu):
    # x: (TM, D); g/b: (1, D); w: (D, Dout) bf16; bias: (1, Dout) or None.
    x = x_ref[...].astype(jnp.float32)
    mean = jnp.mean(x, axis=-1, keepdims=True)
    xc = x - mean
    var = jnp.mean(xc * xc, axis=-1, keepdims=True)       # two-pass, f32
    xn = xc * jax.lax.rsqrt(var + EPS) * g_ref[...] + b_ref[...]
    # bf16 MXU operands (full-rate matmul on all gens), f32 accumulation.
    y = jnp.dot(xn.astype(jnp.bfloat16), w_ref[...],
                preferred_element_type=jnp.float32)
    if bias_ref is not None:
        y = y + bias_ref[...]
    if fuse_gelu:
        y = _gelu_exact_f32(y)
    o_ref[...] = y.astype(o_ref.dtype)


def _make_ln_linear_kernel(has_bias, fuse_gelu):
    if has_bias:
        def kernel(x_ref, g_ref, b_ref, w_ref, bias_ref, o_ref):
            _ln_linear_body(x_ref, g_ref, b_ref, w_ref, bias_ref, o_ref, fuse_gelu)
    else:
        def kernel(x_ref, g_ref, b_ref, w_ref, o_ref):
            _ln_linear_body(x_ref, g_ref, b_ref, w_ref, None, o_ref, fuse_gelu)
    return kernel


def ln_linear(x, gamma, beta, w, bias=None, *, gelu=False, use_pallas=True):
    """y = [GELU](LayerNorm(x) @ w (+ bias)); LayerNorm over the last dim."""
    if not use_pallas:  # pure-JAX reference path (used only for the self-check)
        mean = jnp.mean(x, axis=-1, keepdims=True)
        var = jnp.mean((x - mean) ** 2, axis=-1, keepdims=True)
        xn = (x - mean) * jax.lax.rsqrt(var + EPS) * gamma + beta
        y = jnp.matmul(xn, w, precision=jax.lax.Precision.HIGHEST)
        if bias is not None:
            y = y + bias
        if gelu:
            y = jax.nn.gelu(y, approximate=False)
        return y

    *lead, D = x.shape
    Dout = w.shape[1]
    R = int(math.prod(lead))
    x2 = x.reshape(R, D)

    if R <= 8:
        tm = R                                   # full-extent block, single step
    else:
        # >= 2 grid steps so both v7x TensorCores get work; rows stay 8-aligned,
        # large R saturates at an MXU-friendly 512-row tile.
        tm = min(TM_MAX, _round_up(pl.cdiv(R, 2), 8))
    grid = (pl.cdiv(R, tm),)                     # ragged tail block is masked

    g2 = gamma.reshape(1, D).astype(jnp.float32)
    b2 = beta.reshape(1, D).astype(jnp.float32)
    w_bf16 = w.astype(jnp.bfloat16)              # halves weight DMA bytes too

    has_bias = bias is not None
    operands = [x2, g2, b2, w_bf16]
    in_specs = [
        pl.BlockSpec((tm, D), lambda i: (i, 0)),
        pl.BlockSpec((1, D), lambda i: (0, 0)),
        pl.BlockSpec((1, D), lambda i: (0, 0)),
        pl.BlockSpec((D, Dout), lambda i: (0, 0)),
    ]
    if has_bias:
        operands.append(bias.reshape(1, Dout).astype(jnp.float32))
        in_specs.append(pl.BlockSpec((1, Dout), lambda i: (0, 0)))

    out = pl.pallas_call(
        _make_ln_linear_kernel(has_bias, gelu),
        out_shape=jax.ShapeDtypeStruct((R, Dout), x.dtype),
        grid=grid,
        in_specs=in_specs,
        out_specs=pl.BlockSpec((tm, Dout), lambda i: (i, 0)),
        compiler_params=pltpu.CompilerParams(
            dimension_semantics=("parallel",),
            vmem_limit_bytes=32 * 1024 * 1024,   # v5e default scoped limit is 16 MiB
        ),
    )(*operands)

    return out.reshape(*lead, Dout)


# ---------------------------------------------------------------------------
# Model blocks (plain JAX around the Pallas PreNorm kernel).
# ---------------------------------------------------------------------------
def attn_forward(x, p, heads, dim_head, context=None, kv_include_self=False,
                 *, use_pallas=True):
    """PreNorm(Attention): LN fused with the (bias-free) q/kv projections."""
    b, n, _ = x.shape
    inner = heads * dim_head
    scale = dim_head ** -0.5

    w_qkv = jnp.concatenate([p['w_q'], p['w_kv']], axis=1)            # (d, 3*inner)
    qkv = ln_linear(x, p['ln_g'], p['ln_b'], w_qkv, use_pallas=use_pallas)
    q = qkv[..., :inner]
    k = qkv[..., inner:2 * inner]
    v = qkv[..., 2 * inner:]

    if context is not None:
        kv_ctx = context @ p['w_kv']         # to_kv on the raw (un-normalized) context
        k_c, v_c = kv_ctx[..., :inner], kv_ctx[..., inner:]
        if kv_include_self:                  # cat((norm(x), context)) done at kv level
            k = jnp.concatenate([k, k_c], axis=1)
            v = jnp.concatenate([v, v_c], axis=1)
        else:
            k, v = k_c, v_c

    def split_heads(t):
        return t.reshape(b, t.shape[1], heads, dim_head).transpose(0, 2, 1, 3)

    qh, kh, vh = split_heads(q), split_heads(k), split_heads(v)
    dots = jnp.einsum('bhid,bhjd->bhij', qh, kh) * scale
    attn = jax.nn.softmax(dots, axis=-1)
    out = jnp.einsum('bhij,bhjd->bhid', attn, vh)
    out = out.transpose(0, 2, 1, 3).reshape(b, n, inner)
    return out @ p['w_out'] + p['b_out']


def ff_forward(x, p, *, use_pallas=True):
    """PreNorm(FeedForward): LN + first Linear + exact GELU fused in one kernel."""
    h = ln_linear(x, p['ln_g'], p['ln_b'], p['w1'], p['b1'], gelu=True,
                  use_pallas=use_pallas)
    return h @ p['w2'] + p['b2']


def transformer_forward(x, layers, heads, dim_head, *, use_pallas=True):
    for layer in layers:
        x = attn_forward(x, layer['attn'], heads, dim_head, use_pallas=use_pallas) + x
        x = ff_forward(x, layer['ff'], use_pallas=use_pallas) + x
    return x


def cross_transformer_forward(sm_tokens, lg_tokens, layers, heads, dim_head,
                              *, use_pallas=True):
    sm_cls, sm_patch = sm_tokens[:, :1], sm_tokens[:, 1:]
    lg_cls, lg_patch = lg_tokens[:, :1], lg_tokens[:, 1:]
    for layer in layers:   # ProjectInOut is Identity (sm_dim == lg_dim == dim)
        sm_cls = attn_forward(sm_cls, layer['sm_attend_lg'], heads, dim_head,
                              context=lg_patch, kv_include_self=True,
                              use_pallas=use_pallas) + sm_cls
        lg_cls = attn_forward(lg_cls, layer['lg_attend_sm'], heads, dim_head,
                              context=sm_patch, kv_include_self=True,
                              use_pallas=use_pallas) + lg_cls
    sm_tokens = jnp.concatenate([sm_cls, sm_patch], axis=1)
    lg_tokens = jnp.concatenate([lg_cls, lg_patch], axis=1)
    return sm_tokens, lg_tokens


def encoder_forward(sm, lg, layers, heads, dim_head, *, use_pallas=True):
    for layer in layers:
        sm = transformer_forward(sm, layer['sm_enc'], heads, dim_head, use_pallas=use_pallas)
        lg = transformer_forward(lg, layer['lg_enc'], heads, dim_head, use_pallas=use_pallas)
        sm, lg = cross_transformer_forward(sm, lg, layer['cross'], heads, dim_head,
                                           use_pallas=use_pallas)
    return sm, lg


def model_forward(params, x, cfg, *, use_pallas=True):
    heads, dim_head = cfg['heads'], cfg['dim_head']
    ts1, ts2 = cfg['temporal_stride_1'], cfg['temporal_stride_2']
    nt1 = cfg['temporal_size'] // ts1
    pn = cfg['num_joint'] // cfg['partial_num']

    n, c, t, v, m = x.shape

    # --- pre_process: BatchNorm1d over (v*c) features.
    # TODO(synk): running-stat tracking is not modeled; forward uses batch statistics
    # (matches a freshly constructed torch module's forward; weight=1, bias=0).
    y = jnp.transpose(x, (0, 4, 3, 1, 2)).reshape(n * m, v * c, t)     # (n m) (v c) t
    mean = jnp.mean(y, axis=(0, 2), keepdims=True)
    var = jnp.var(y, axis=(0, 2), keepdims=True)
    y = (y - mean) * jax.lax.rsqrt(var + BN_EPS)
    x_pre = jnp.transpose(y.reshape(n, m, v, c, t), (0, 3, 4, 2, 1))   # n c t v m

    # --- to_patch_embedding (scale 1) ---
    x1 = jnp.transpose(x_pre, (0, 4, 2, 3, 1)).reshape(n * m, t, v, c)
    x1 = x1.reshape(n * m, nt1, ts1 * v * c)
    x1 = x1 @ params['patch1_w'] + params['patch1_b']

    # --- segment_embedding (scale 2) ---
    x2 = jnp.transpose(x_pre, (0, 4, 2, 3, 1)).reshape(n * m, t, v, c)
    parts = [x2[:, :, params['partial_point'][i], :] for i in range(cfg['partial_num'])]
    x2 = jnp.concatenate(parts, axis=2)
    b2_, T_, V_, C_ = x2.shape
    t_, v_ = T_ // ts2, V_ // pn
    x2 = x2.reshape(b2_, t_, ts2, v_, pn, C_)
    x2 = jnp.transpose(x2, (0, 1, 3, 2, 4, 5)).reshape(b2_, t_ * v_, ts2 * pn * C_)
    x2 = x2 @ params['patch2_w'] + params['patch2_b']

    # --- cls tokens + positional embeddings (emb dropout = 0 -> identity) ---
    b1, t1, dim = x1.shape
    b2, t2, _ = x2.shape
    cls1 = jnp.broadcast_to(params['cls_token_1'], (b1, 1, dim))
    cls2 = jnp.broadcast_to(params['cls_token_2'], (b2, 1, dim))
    x1 = jnp.concatenate([cls1, x1], axis=1) + params['pos_embedding_1'][:, :t1 + 1]
    x2 = jnp.concatenate([cls2, x2], axis=1) + params['pos_embedding_2'][:, :t2 + 1]

    # --- multi-scale encoder ---
    x1, x2 = encoder_forward(x1, x2, params['encoder'], heads, dim_head,
                             use_pallas=use_pallas)

    # --- average over the 2 persons, cls pooling ---
    x1 = x1.reshape(b1 // 2, 2, x1.shape[1], dim).mean(axis=1)
    x2 = x2.reshape(b2 // 2, 2, x2.shape[1], dim).mean(axis=1)
    if cfg['pool'] == 'mean':
        x1, x2 = x1.mean(axis=1), x2.mean(axis=1)
    else:
        x1, x2 = x1[:, 0], x2[:, 0]

    # --- mlp heads: Dout = num_classes (10) is lane-sparse and batch is tiny,
    #     so these stay in XLA (kernel launch overhead would exceed the work).
    h1 = ln_linear(x1, params['head1_ln_g'], params['head1_ln_b'],
                   params['head1_w'], params['head1_b'], use_pallas=False)
    h2 = ln_linear(x2, params['head2_ln_g'], params['head2_ln_b'],
                   params['head2_w'], params['head2_b'], use_pallas=False)
    return h1 + h2


# ---------------------------------------------------------------------------
# Deterministic parameter init (structure matches the PyTorch module).
# ---------------------------------------------------------------------------
def _lin(key, din, dout, scale=0.02):
    return jax.random.normal(key, (din, dout), jnp.float32) * scale


def init_attention(key, dim, heads, dim_head):
    inner = heads * dim_head
    k1, k2, k3 = jax.random.split(key, 3)
    return {
        'ln_g': jnp.ones((dim,), jnp.float32), 'ln_b': jnp.zeros((dim,), jnp.float32),
        'w_q': _lin(k1, dim, inner),             # to_q (no bias)
        'w_kv': _lin(k2, dim, 2 * inner),        # to_kv (no bias)
        'w_out': _lin(k3, inner, dim), 'b_out': jnp.zeros((dim,), jnp.float32),
    }


def init_ff(key, dim, mlp_dim):
    k1, k2 = jax.random.split(key)
    return {
        'ln_g': jnp.ones((dim,), jnp.float32), 'ln_b': jnp.zeros((dim,), jnp.float32),
        'w1': _lin(k1, dim, mlp_dim), 'b1': jnp.zeros((mlp_dim,), jnp.float32),
        'w2': _lin(k2, mlp_dim, dim), 'b2': jnp.zeros((dim,), jnp.float32),
    }


def init_transformer(key, dim, depth, heads, dim_head, mlp_dim):
    layers = []
    for i in range(depth):
        k1, k2 = jax.random.split(jax.random.fold_in(key, i))
        layers.append({'attn': init_attention(k1, dim, heads, dim_head),
                       'ff': init_ff(k2, dim, mlp_dim)})
    return layers


def init_cross(key, dim, depth, heads, dim_head):
    layers = []
    for i in range(depth):
        k1, k2 = jax.random.split(jax.random.fold_in(key, i))
        layers.append({'sm_attend_lg': init_attention(k1, dim, heads, dim_head),
                       'lg_attend_sm': init_attention(k2, dim, heads, dim_head)})
    return layers


def init_params(key, cfg):
    dim, heads, dim_head = cfg['dim'], cfg['heads'], cfg['dim_head']
    nt1 = cfg['temporal_size'] // cfg['temporal_stride_1']
    nt2 = cfg['temporal_size'] // cfg['temporal_stride_2'] * cfg['partial_num']
    pn = cfg['num_joint'] // cfg['partial_num']
    token_dim_1 = cfg['temporal_stride_1'] * cfg['num_joint'] * cfg['channels']
    token_dim_2 = cfg['temporal_stride_2'] * pn * cfg['channels']

    keys = jax.random.split(key, 10)
    params = {
        'partial_point': jnp.array(
            [[10, 11, 12, 25, 24], [6, 7, 8, 23, 22], [9, 5, 2, 3, 4],
             [1, 17, 18, 19, 20], [1, 13, 14, 15, 16]], dtype=jnp.int32) - 1,
        'patch1_w': _lin(keys[0], token_dim_1, dim),
        'patch1_b': jnp.zeros((dim,), jnp.float32),
        'patch2_w': _lin(keys[1], token_dim_2, dim),
        'patch2_b': jnp.zeros((dim,), jnp.float32),
        'pos_embedding_1': jax.random.normal(keys[2], (1, nt1 + 1, dim), jnp.float32),
        'pos_embedding_2': jax.random.normal(keys[3], (1, nt2 + 1, dim), jnp.float32),
        'cls_token_1': jax.random.normal(keys[4], (1, 1, dim), jnp.float32),
        'cls_token_2': jax.random.normal(keys[5], (1, 1, dim), jnp.float32),
        'head1_ln_g': jnp.ones((dim,), jnp.float32),
        'head1_ln_b': jnp.zeros((dim,), jnp.float32),
        'head1_w': _lin(keys[6], dim, cfg['num_classes']),
        'head1_b': jnp.zeros((cfg['num_classes'],), jnp.float32),
        'head2_ln_g': jnp.ones((dim,), jnp.float32),
        'head2_ln_b': jnp.zeros((dim,), jnp.float32),
        'head2_w': _lin(keys[7], dim, cfg['num_classes']),
        'head2_b': jnp.zeros((cfg['num_classes'],), jnp.float32),
    }
    enc_layers = []
    for d in range(cfg['depth']):
        k_sm, k_lg, k_cross = jax.random.split(jax.random.fold_in(keys[8], d), 3)
        enc_layers.append({
            'sm_enc': init_transformer(k_sm, dim, cfg['lg_depth'], heads, dim_head, cfg['mlp_dim']),
            'lg_enc': init_transformer(k_lg, dim, cfg['sm_depth'], heads, dim_head, cfg['mlp_dim']),
            'cross': init_cross(k_cross, dim, cfg['cross_depth'], heads, dim_head),
        })
    params['encoder'] = enc_layers
    return params


if __name__ == "__main__":
    cfg = dict(
        temporal_size=8, temporal_stride_1=4, temporal_stride_2=2,
        num_joint=25, num_classes=10, dim=128, depth=1, lg_depth=1, sm_depth=1,
        cross_depth=1, heads=2, mlp_dim=128, pool='cls', channels=3,
        partial_num=5, dim_head=64,
    )
    key = jax.random.PRNGKey(0)
    k_param, k_x = jax.random.split(key)
    params = init_params(k_param, cfg)

    # Skeleton input: (batch, channels, temporal, joints, persons)
    x = jax.random.normal(
        k_x, (2, cfg['channels'], cfg['temporal_size'], cfg['num_joint'], 2),
        dtype=jnp.float32)

    fwd = jax.jit(lambda p, a: model_forward(p, a, cfg, use_pallas=True))
    out = jax.block_until_ready(fwd(params, x))

    # Direct unit checks of the fused kernel (tolerances absorb bf16 MXU operands).
    xt = jax.random.normal(jax.random.PRNGKey(1), (4, 3, 128), jnp.float32)
    wt = jax.random.normal(jax.random.PRNGKey(2), (128, 384), jnp.float32) * 0.02
    g, b = jnp.ones((128,), jnp.float32), jnp.zeros((128,), jnp.float32)
    y_k = ln_linear(xt, g, b, wt, use_pallas=True)                 # bias-free (q/kv path)
    y_r = ln_linear(xt, g, b, wt, use_pallas=False)
    assert jnp.allclose(y_k, y_r, atol=2e-2, rtol=2e-2), "ln_linear kernel mismatch"

    wt2 = jax.random.normal(jax.random.PRNGKey(3), (128, 128), jnp.float32) * 0.02
    bt2 = jax.random.normal(jax.random.PRNGKey(4), (128,), jnp.float32) * 0.1
    z_k = ln_linear(xt, g, b, wt2, bt2, gelu=True, use_pallas=True)  # FF path (bias+GELU)
    z_r = ln_linear(xt, g, b, wt2, bt2, gelu=True, use_pallas=False)
    assert jnp.allclose(z_k, z_r, atol=2e-2, rtol=2e-2), "ln_linear+gelu kernel mismatch"

    # End-to-end check against the pure-JAX forward (kernel replaced by jnp).
    ref = model_forward(params, x, cfg, use_pallas=False)
    assert out.shape == (2, cfg['num_classes'])
    assert jnp.allclose(out, ref, atol=2e-2, rtol=2e-2), "mismatch vs pure-JAX reference"

    print("KERNEL_OK")
</pallas_src>

<mosaic_0001>
module attributes {stable_mosaic.version = 11 : i64} {
  func.func @kernel(%arg0: i32, %arg1: memref<48x128xf32, #tpu.memory_space<vmem>>, %arg2: memref<1x128xf32, #tpu.memory_space<vmem>>, %arg3: memref<1x128xf32, #tpu.memory_space<vmem>>, %arg4: memref<128x384xbf16, #tpu.memory_space<vmem>>, %arg5: memref<48x384xf32, #tpu.memory_space<vmem>>) attributes {dimension_semantics = [#tpu.dimension_semantics<parallel>], iteration_bounds = array<i64: 2>, scalar_prefetch = 0 : i64, scratch_operands = 0 : i64, tpu.core_type = #tpu.core_type<tc>, window_params = [{transform_indices = @transform_0, window_bounds = array<i64: 48, 128>}, {pipeline_mode = #tpu.pipeline_mode<synchronous>, transform_indices = @transform_1, window_bounds = array<i64: 1, 128>}, {pipeline_mode = #tpu.pipeline_mode<synchronous>, transform_indices = @transform_2, window_bounds = array<i64: 1, 128>}, {pipeline_mode = #tpu.pipeline_mode<synchronous>, transform_indices = @transform_3, window_bounds = array<i64: 128, 384>}, {transform_indices = @transform_4, window_bounds = array<i64: 48, 384>}]} {
    %c0 = arith.constant 0 : index
    %c0_0 = arith.constant 0 : index
    %0 = vector.load %arg1[%c0, %c0_0] : memref<48x128xf32, #tpu.memory_space<vmem>>, vector<48x128xf32>
    %cst = arith.constant dense<0.000000e+00> : vector<48xf32>
    %1 = vector.multi_reduction <add>, %0, %cst [1] : vector<48x128xf32> to vector<48xf32>
    %2 = vector.shape_cast %1 : vector<48xf32> to vector<48x1xf32>
    %cst_1 = arith.constant 1.280000e+02 : f32
    %3 = vector.broadcast %cst_1 : f32 to vector<48x1xf32>
    %4 = arith.divf %2, %3 : vector<48x1xf32>
    %5 = vector.broadcast %4 : vector<48x1xf32> to vector<48x128xf32>
    %6 = arith.subf %0, %5 : vector<48x128xf32>
    %7 = arith.mulf %6, %6 : vector<48x128xf32>
    %cst_2 = arith.constant dense<0.000000e+00> : vector<48xf32>
    %8 = vector.multi_reduction <add>, %7, %cst_2 [1] : vector<48x128xf32> to vector<48xf32>
    %9 = vector.shape_cast %8 : vector<48xf32> to vector<48x1xf32>
    %cst_3 = arith.constant 1.280000e+02 : f32
    %10 = vector.broadcast %cst_3 : f32 to vector<48x1xf32>
    %11 = arith.divf %9, %10 : vector<48x1xf32>
    %cst_4 = arith.constant 9.99999974E-6 : f32
    %12 = vector.broadcast %cst_4 : f32 to vector<48x1xf32>
    %13 = arith.addf %11, %12 : vector<48x1xf32>
    %14 = math.rsqrt %13 : vector<48x1xf32>
    %15 = vector.broadcast %14 : vector<48x1xf32> to vector<48x128xf32>
    %16 = arith.mulf %6, %15 : vector<48x128xf32>
    %c0_5 = arith.constant 0 : index
    %c0_6 = arith.constant 0 : index
    %17 = vector.load %arg2[%c0_5, %c0_6] : memref<1x128xf32, #tpu.memory_space<vmem>>, vector<1x128xf32>
    %18 = vector.broadcast %17 : vector<1x128xf32> to vector<48x128xf32>
    %19 = arith.mulf %16, %18 : vector<48x128xf32>
    %c0_7 = arith.constant 0 : index
    %c0_8 = arith.constant 0 : index
    %20 = vector.load %arg3[%c0_7, %c0_8] : memref<1x128xf32, #tpu.memory_space<vmem>>, vector<1x128xf32>
    %21 = vector.broadcast %20 : vector<1x128xf32> to vector<48x128xf32>
    %22 = arith.addf %19, %21 : vector<48x128xf32>
    %23 = arith.truncf %22 : vector<48x128xf32> to vector<48x128xbf16>
    %c0_9 = arith.constant 0 : index
    %c0_10 = arith.constant 0 : index
    %24 = vector.load %arg4[%c0_9, %c0_10] : memref<128x384xbf16, #tpu.memory_space<vmem>>, vector<128x384xbf16>
    %cst_11 = arith.constant dense<0.000000e+00> : vector<48x384xf32>
    %25 = tpu.matmul %23, %24, %cst_11 {dimension_numbers = #tpu.dot_dimension_numbers<[1], [0], [0], [1], [0, 0, 1, 1], [], []>} : vector<48x128xbf16>, vector<128x384xbf16>, vector<48x384xf32> -> vector<48x384xf32>
    %c0_12 = arith.constant 0 : index
    %c0_13 = arith.constant 0 : index
    %26 = vector.load %arg5[%c0_12, %c0_13] : memref<48x384xf32, #tpu.memory_space<vmem>>, vector<48x384xf32>
    tpu.vector_store %arg5[%c0_12, %c0_13], %25 {strides = array<i32>} : memref<48x384xf32, #tpu.memory_space<vmem>>, vector<48x384xf32>,
    return
  }
  func.func @transform_0(%arg0: i32) -> (i32, i32) {
    %c0_i32 = arith.constant 0 : i32
    %c0_i32_0 = arith.constant 0 : i32
    return %arg0, %c0_i32 : i32, i32
  }
  func.func @transform_1(%arg0: i32) -> (i32, i32) {
    %c0_i32 = arith.constant 0 : i32
    %c0_i32_0 = arith.constant 0 : i32
    %c0_i32_1 = arith.constant 0 : i32
    return %c0_i32, %c0_i32_0 : i32, i32
  }
  func.func @transform_2(%arg0: i32) -> (i32, i32) {
    %c0_i32 = arith.constant 0 : i32
    %c0_i32_0 = arith.constant 0 : i32
    %c0_i32_1 = arith.constant 0 : i32
    return %c0_i32, %c0_i32_0 : i32, i32
  }
  func.func @transform_3(%arg0: i32) -> (i32, i32) {
    %c0_i32 = arith.constant 0 : i32
    %c0_i32_0 = arith.constant 0 : i32
    %c0_i32_1 = arith.constant 0 : i32
    return %c0_i32, %c0_i32_0 : i32, i32
  }
  func.func @transform_4(%arg0: i32) -> (i32, i32) {
    %c0_i32 = arith.constant 0 : i32
    %c0_i32_0 = arith.constant 0 : i32
    return %arg0, %c0_i32 : i32, i32
  }
}

module attributes {stable_mosaic.version = 11 : i64} {
  func.func @kernel(%arg0: i32, %arg1: memref<48x128xf32, #tpu.memory_space<vmem>>, %arg2: memref<1x128xf32, #tpu.memory_space<vmem>>, %arg3: memref<1x128xf32, #tpu.memory_space<vmem>>, %arg4: memref<128x128xbf16, #tpu.memory_space<vmem>>, %arg5: memref<1x128xf32, #tpu.memory_space<vmem>>, %arg6: memref<48x128xf32, #tpu.memory_space<vmem>>) attributes {dimension_semantics = [#tpu.dimension_semantics<parallel>], iteration_bounds = array<i64: 2>, scalar_prefetch = 0 : i64, scratch_operands = 0 : i64, tpu.core_type = #tpu.core_type<tc>, window_params = [{transform_indices = @transform_0, window_bounds = array<i64: 48, 128>}, {pipeline_mode = #tpu.pipeline_mode<synchronous>, transform_indices = @transform_1, window_bounds = array<i64: 1, 128>}, {pipeline_mode = #tpu.pipeline_mode<synchronous>, transform_indices = @transform_2, window_bounds = array<i64: 1, 128>}, {pipeline_mode = #tpu.pipeline_mode<synchronous>, transform_indices = @transform_3, window_bounds = array<i64: 128, 128>}, {pipeline_mode = #tpu.pipeline_mode<synchronous>, transform_indices = @transform_4, window_bounds = array<i64: 1, 128>}, {transform_indices = @transform_5, window_bounds = array<i64: 48, 128>}]} {
    %c0 = arith.constant 0 : index
    %c0_0 = arith.constant 0 : index
    %0 = vector.load %arg1[%c0, %c0_0] : memref<48x128xf32, #tpu.memory_space<vmem>>, vector<48x128xf32>
    %cst = arith.constant dense<0.000000e+00> : vector<48xf32>
    %1 = vector.multi_reduction <add>, %0, %cst [1] : vector<48x128xf32> to vector<48xf32>
    %2 = vector.shape_cast %1 : vector<48xf32> to vector<48x1xf32>
    %cst_1 = arith.constant 1.280000e+02 : f32
    %3 = vector.broadcast %cst_1 : f32 to vector<48x1xf32>
    %4 = arith.divf %2, %3 : vector<48x1xf32>
    %5 = vector.broadcast %4 : vector<48x1xf32> to vector<48x128xf32>
    %6 = arith.subf %0, %5 : vector<48x128xf32>
    %7 = arith.mulf %6, %6 : vector<48x128xf32>
    %cst_2 = arith.constant dense<0.000000e+00> : vector<48xf32>
    %8 = vector.multi_reduction <add>, %7, %cst_2 [1] : vector<48x128xf32> to vector<48xf32>
    %9 = vector.shape_cast %8 : vector<48xf32> to vector<48x1xf32>
    %cst_3 = arith.constant 1.280000e+02 : f32
    %10 = vector.broadcast %cst_3 : f32 to vector<48x1xf32>
    %11 = arith.divf %9, %10 : vector<48x1xf32>
    %cst_4 = arith.constant 9.99999974E-6 : f32
    %12 = vector.broadcast %cst_4 : f32 to vector<48x1xf32>
    %13 = arith.addf %11, %12 : vector<48x1xf32>
    %14 = math.rsqrt %13 : vector<48x1xf32>
    %15 = vector.broadcast %14 : vector<48x1xf32> to vector<48x128xf32>
    %16 = arith.mulf %6, %15 : vector<48x128xf32>
    %c0_5 = arith.constant 0 : index
    %c0_6 = arith.constant 0 : index
    %17 = vector.load %arg2[%c0_5, %c0_6] : memref<1x128xf32, #tpu.memory_space<vmem>>, vector<1x128xf32>
    %18 = vector.broadcast %17 : vector<1x128xf32> to vector<48x128xf32>
    %19 = arith.mulf %16, %18 : vector<48x128xf32>
    %c0_7 = arith.constant 0 : index
    %c0_8 = arith.constant 0 : index
    %20 = vector.load %arg3[%c0_7, %c0_8] : memref<1x128xf32, #tpu.memory_space<vmem>>, vector<1x128xf32>
    %21 = vector.broadcast %20 : vector<1x128xf32> to vector<48x128xf32>
    %22 = arith.addf %19, %21 : vector<48x128xf32>
    %23 = arith.truncf %22 : vector<48x128xf32> to vector<48x128xbf16>
    %c0_9 = arith.constant 0 : index
    %c0_10 = arith.constant 0 : index
    %24 = vector.load %arg4[%c0_9, %c0_10] : memref<128x128xbf16, #tpu.memory_space<vmem>>, vector<128x128xbf16>
    %cst_11 = arith.constant dense<0.000000e+00> : vector<48x128xf32>
    %25 = tpu.matmul %23, %24, %cst_11 {dimension_numbers = #tpu.dot_dimension_numbers<[1], [0], [0], [1], [0, 0, 1, 1], [], []>} : vector<48x128xbf16>, vector<128x128xbf16>, vector<48x128xf32> -> vector<48x128xf32>
    %c0_12 = arith.constant 0 : index
    %c0_13 = arith.constant 0 : index
    %26 = vector.load %arg5[%c0_12, %c0_13] : memref<1x128xf32, #tpu.memory_space<vmem>>, vector<1x128xf32>
    %27 = vector.broadcast %26 : vector<1x128xf32> to vector<48x128xf32>
    %28 = arith.addf %25, %27 : vector<48x128xf32>
    %cst_14 = arith.constant 5.000000e-01 : f32
    %29 = vector.broadcast %cst_14 : f32 to vector<48x128xf32>
    %30 = arith.mulf %29, %28 : vector<48x128xf32>
    %cst_15 = arith.constant 0.707106769 : f32
    %31 = vector.broadcast %cst_15 : f32 to vector<48x128xf32>
    %32 = arith.mulf %28, %31 : vector<48x128xf32>
    %33 = math.absf %32 : vector<48x128xf32>
    %cst_16 = arith.constant 0.327591091 : f32
    %34 = vector.broadcast %cst_16 : f32 to vector<48x128xf32>
    %35 = arith.mulf %34, %33 : vector<48x128xf32>
    %cst_17 = arith.constant 1.000000e+00 : f32
    %36 = vector.broadcast %cst_17 : f32 to vector<48x128xf32>
    %37 = arith.addf %36, %35 : vector<48x128xf32>
    %cst_18 = arith.constant 1.000000e+00 : f32
    %38 = vector.broadcast %cst_18 : f32 to vector<48x128xf32>
    %39 = arith.divf %38, %37 : vector<48x128xf32>
    %cst_19 = arith.constant 1.06140542 : f32
    %40 = vector.broadcast %cst_19 : f32 to vector<48x128xf32>
    %41 = arith.mulf %39, %40 : vector<48x128xf32>
    %cst_20 = arith.constant -1.45315206 : f32
    %42 = vector.broadcast %cst_20 : f32 to vector<48x128xf32>
    %43 = arith.addf %42, %41 : vector<48x128xf32>
    %44 = arith.mulf %39, %43 : vector<48x128xf32>
    %cst_21 = arith.constant 1.42141378 : f32
    %45 = vector.broadcast %cst_21 : f32 to vector<48x128xf32>
    %46 = arith.addf %45, %44 : vector<48x128xf32>
    %47 = arith.mulf %39, %46 : vector<48x128xf32>
    %cst_22 = arith.constant -0.284496725 : f32
    %48 = vector.broadcast %cst_22 : f32 to vector<48x128xf32>
    %49 = arith.addf %48, %47 : vector<48x128xf32>
    %50 = arith.mulf %39, %49 : vector<48x128xf32>
    %cst_23 = arith.constant 0.254829586 : f32
    %51 = vector.broadcast %cst_23 : f32 to vector<48x128xf32>
    %52 = arith.addf %51, %50 : vector<48x128xf32>
    %53 = arith.mulf %39, %52 : vector<48x128xf32>
    %cst_24 = arith.constant 0.000000e+00 : f32
    %54 = vector.broadcast %cst_24 : f32 to vector<48x128xf32>
    %55 = arith.subf %54, %33 : vector<48x128xf32>
    %56 = arith.mulf %55, %33 : vector<48x128xf32>
    %57 = math.exp %56 : vector<48x128xf32>
    %58 = arith.mulf %53, %57 : vector<48x128xf32>
    %cst_25 = arith.constant 1.000000e+00 : f32
    %59 = vector.broadcast %cst_25 : f32 to vector<48x128xf32>
    %60 = arith.subf %59, %58 : vector<48x128xf32>
    %cst_26 = arith.constant 0.000000e+00 : f32
    %61 = vector.broadcast %cst_26 : f32 to vector<48x128xf32>
    %62 = arith.cmpf olt, %32, %61 : vector<48x128xf32>
    %cst_27 = arith.constant 0.000000e+00 : f32
    %63 = vector.broadcast %cst_27 : f32 to vector<48x128xf32>
    %64 = arith.subf %63, %60 : vector<48x128xf32>
    %65 = arith.select %62, %64, %60 : vector<48x128xi1>, vector<48x128xf32>
    %cst_28 = arith.constant 1.000000e+00 : f32
    %66 = vector.broadcast %cst_28 : f32 to vector<48x128xf32>
    %67 = arith.addf %66, %65 : vector<48x128xf32>
    %68 = arith.mulf %30, %67 : vector<48x128xf32>
    %c0_29 = arith.constant 0 : index
    %c0_30 = arith.constant 0 : index
    %69 = vector.load %arg6[%c0_29, %c0_30] : memref<48x128xf32, #tpu.memory_space<vmem>>, vector<48x128xf32>
    tpu.vector_store %arg6[%c0_29, %c0_30], %68 {strides = array<i32>} : memref<48x128xf32, #tpu.memory_space<vmem>>, vector<48x128xf32>,
    return
  }
  func.func @transform_0(%arg0: i32) -> (i32, i32) {
    %c0_i32 = arith.constant 0 : i32
    %c0_i32_0 = arith.constant 0 : i32
    return %arg0, %c0_i32 : i32, i32
  }
  func.func @transform_1(%arg0: i32) -> (i32, i32) {
    %c0_i32 = arith.constant 0 : i32
    %c0_i32_0 = arith.constant 0 : i32
    %c0_i32_1 = arith.constant 0 : i32
    return %c0_i32, %c0_i32_0 : i32, i32
  }
  func.func @transform_2(%arg0: i32) -> (i32, i32) {
    %c0_i32 = arith.constant 0 : i32
    %c0_i32_0 = arith.constant 0 : i32
    %c0_i32_1 = arith.constant 0 : i32
    return %c0_i32, %c0_i32_0 : i32, i32
  }
  func.func @transform_3(%arg0: i32) -> (i32, i32) {
    %c0_i32 = arith.constant 0 : i32
    %c0_i32_0 = arith.constant 0 : i32
    %c0_i32_1 = arith.constant 0 : i32
    return %c0_i32, %c0_i32_0 : i32, i32
  }
  func.func @transform_4(%arg0: i32) -> (i32, i32) {
    %c0_i32 = arith.constant 0 : i32
    %c0_i32_0 = arith.constant 0 : i32
    %c0_i32_1 = arith.constant 0 : i32
    return %c0_i32, %c0_i32_0 : i32, i32
  }
  func.func @transform_5(%arg0: i32) -> (i32, i32) {
    %c0_i32 = arith.constant 0 : i32
    %c0_i32_0 = arith.constant 0 : i32
    return %arg0, %c0_i32 : i32, i32
  }
}

module attributes {stable_mosaic.version = 11 : i64} {
  func.func @kernel(%arg0: i32, %arg1: memref<8x128xf32, #tpu.memory_space<vmem>>, %arg2: memref<1x128xf32, #tpu.memory_space<vmem>>, %arg3: memref<1x128xf32, #tpu.memory_space<vmem>>, %arg4: memref<128x384xbf16, #tpu.memory_space<vmem>>, %arg5: memref<8x384xf32, #tpu.memory_space<vmem>>) attributes {dimension_semantics = [#tpu.dimension_semantics<parallel>], iteration_bounds = array<i64: 2>, scalar_prefetch = 0 : i64, scratch_operands = 0 : i64, tpu.core_type = #tpu.core_type<tc>, window_params = [{transform_indices = @transform_0, window_bounds = array<i64: 8, 128>}, {pipeline_mode = #tpu.pipeline_mode<synchronous>, transform_indices = @transform_1, window_bounds = array<i64: 1, 128>}, {pipeline_mode = #tpu.pipeline_mode<synchronous>, transform_indices = @transform_2, window_bounds = array<i64: 1, 128>}, {pipeline_mode = #tpu.pipeline_mode<synchronous>, transform_indices = @transform_3, window_bounds = array<i64: 128, 384>}, {transform_indices = @transform_4, window_bounds = array<i64: 8, 384>}]} {
    %c0 = arith.constant 0 : index
    %c0_0 = arith.constant 0 : index
    %0 = vector.load %arg1[%c0, %c0_0] : memref<8x128xf32, #tpu.memory_space<vmem>>, vector<8x128xf32>
    %cst = arith.constant dense<0.000000e+00> : vector<8xf32>
    %1 = vector.multi_reduction <add>, %0, %cst [1] : vector<8x128xf32> to vector<8xf32>
    %2 = vector.shape_cast %1 : vector<8xf32> to vector<8x1xf32>
    %cst_1 = arith.constant 1.280000e+02 : f32
    %3 = vector.broadcast %cst_1 : f32 to vector<8x1xf32>
    %4 = arith.divf %2, %3 : vector<8x1xf32>
    %5 = vector.broadcast %4 : vector<8x1xf32> to vector<8x128xf32>
    %6 = arith.subf %0, %5 : vector<8x128xf32>
    %7 = arith.mulf %6, %6 : vector<8x128xf32>
    %cst_2 = arith.constant dense<0.000000e+00> : vector<8xf32>
    %8 = vector.multi_reduction <add>, %7, %cst_2 [1] : vector<8x128xf32> to vector<8xf32>
    %9 = vector.shape_cast %8 : vector<8xf32> to vector<8x1xf32>
    %cst_3 = arith.constant 1.280000e+02 : f32
    %10 = vector.broadcast %cst_3 : f32 to vector<8x1xf32>
    %11 = arith.divf %9, %10 : vector<8x1xf32>
    %cst_4 = arith.constant 9.99999974E-6 : f32
    %12 = vector.broadcast %cst_4 : f32 to vector<8x1xf32>
    %13 = arith.addf %11, %12 : vector<8x1xf32>
    %14 = math.rsqrt %13 : vector<8x1xf32>
    %15 = vector.broadcast %14 : vector<8x1xf32> to vector<8x128xf32>
    %16 = arith.mulf %6, %15 : vector<8x128xf32>
    %c0_5 = arith.constant 0 : index
    %c0_6 = arith.constant 0 : index
    %17 = vector.load %arg2[%c0_5, %c0_6] : memref<1x128xf32, #tpu.memory_space<vmem>>, vector<1x128xf32>
    %18 = vector.broadcast %17 : vector<1x128xf32> to vector<8x128xf32>
    %19 = arith.mulf %16, %18 : vector<8x128xf32>
    %c0_7 = arith.constant 0 : index
    %c0_8 = arith.constant 0 : index
    %20 = vector.load %arg3[%c0_7, %c0_8] : memref<1x128xf32, #tpu.memory_space<vmem>>, vector<1x128xf32>
    %21 = vector.broadcast %20 : vector<1x128xf32> to vector<8x128xf32>
    %22 = arith.addf %19, %21 : vector<8x128xf32>
    %23 = arith.truncf %22 : vector<8x128xf32> to vector<8x128xbf16>
    %c0_9 = arith.constant 0 : index
    %c0_10 = arith.constant 0 : index
    %24 = vector.load %arg4[%c0_9, %c0_10] : memref<128x384xbf16, #tpu.memory_space<vmem>>, vector<128x384xbf16>
    %cst_11 = arith.constant dense<0.000000e+00> : vector<8x384xf32>
    %25 = tpu.matmul %23, %24, %cst_11 {dimension_numbers = #tpu.dot_dimension_numbers<[1], [0], [0], [1], [0, 0, 1, 1], [], []>} : vector<8x128xbf16>, vector<128x384xbf16>, vector<8x384xf32> -> vector<8x384xf32>
    %c0_12 = arith.constant 0 : index
    %c0_13 = arith.constant 0 : index
    %26 = vector.load %arg5[%c0_12, %c0_13] : memref<8x384xf32, #tpu.memory_space<vmem>>, vector<8x384xf32>
    tpu.vector_store %arg5[%c0_12, %c0_13], %25 {strides = array<i32>} : memref<8x384xf32, #tpu.memory_space<vmem>>, vector<8x384xf32>,
    return
  }
  func.func @transform_0(%arg0: i32) -> (i32, i32) {
    %c0_i32 = arith.constant 0 : i32
    %c0_i32_0 = arith.constant 0 : i32
    return %arg0, %c0_i32 : i32, i32
  }
  func.func @transform_1(%arg0: i32) -> (i32, i32) {
    %c0_i32 = arith.constant 0 : i32
    %c0_i32_0 = arith.constant 0 : i32
    %c0_i32_1 = arith.constant 0 : i32
    return %c0_i32, %c0_i32_0 : i32, i32
  }
  func.func @transform_2(%arg0: i32) -> (i32, i32) {
    %c0_i32 = arith.constant 0 : i32
    %c0_i32_0 = arith.constant 0 : i32
    %c0_i32_1 = arith.constant 0 : i32
    return %c0_i32, %c0_i32_0 : i32, i32
  }
  func.func @transform_3(%arg0: i32) -> (i32, i32) {
    %c0_i32 = arith.constant 0 : i32
    %c0_i32_0 = arith.constant 0 : i32
    %c0_i32_1 = arith.constant 0 : i32
    return %c0_i32, %c0_i32_0 : i32, i32
  }
  func.func @transform_4(%arg0: i32) -> (i32, i32) {
    %c0_i32 = arith.constant 0 : i32
    %c0_i32_0 = arith.constant 0 : i32
    return %arg0, %c0_i32 : i32, i32
  }
}

module attributes {stable_mosaic.version = 11 : i64} {
  func.func @kernel(%arg0: i32, %arg1: memref<8x128xf32, #tpu.memory_space<vmem>>, %arg2: memref<1x128xf32, #tpu.memory_space<vmem>>, %arg3: memref<1x128xf32, #tpu.memory_space<vmem>>, %arg4: memref<128x128xbf16, #tpu.memory_space<vmem>>, %arg5: memref<1x128xf32, #tpu.memory_space<vmem>>, %arg6: memref<8x128xf32, #tpu.memory_space<vmem>>) attributes {dimension_semantics = [#tpu.dimension_semantics<parallel>], iteration_bounds = array<i64: 2>, scalar_prefetch = 0 : i64, scratch_operands = 0 : i64, tpu.core_type = #tpu.core_type<tc>, window_params = [{transform_indices = @transform_0, window_bounds = array<i64: 8, 128>}, {pipeline_mode = #tpu.pipeline_mode<synchronous>, transform_indices = @transform_1, window_bounds = array<i64: 1, 128>}, {pipeline_mode = #tpu.pipeline_mode<synchronous>, transform_indices = @transform_2, window_bounds = array<i64: 1, 128>}, {pipeline_mode = #tpu.pipeline_mode<synchronous>, transform_indices = @transform_3, window_bounds = array<i64: 128, 128>}, {pipeline_mode = #tpu.pipeline_mode<synchronous>, transform_indices = @transform_4, window_bounds = array<i64: 1, 128>}, {transform_indices = @transform_5, window_bounds = array<i64: 8, 128>}]} {
    %c0 = arith.constant 0 : index
    %c0_0 = arith.constant 0 : index
    %0 = vector.load %arg1[%c0, %c0_0] : memref<8x128xf32, #tpu.memory_space<vmem>>, vector<8x128xf32>
    %cst = arith.constant dense<0.000000e+00> : vector<8xf32>
    %1 = vector.multi_reduction <add>, %0, %cst [1] : vector<8x128xf32> to vector<8xf32>
    %2 = vector.shape_cast %1 : vector<8xf32> to vector<8x1xf32>
    %cst_1 = arith.constant 1.280000e+02 : f32
    %3 = vector.broadcast %cst_1 : f32 to vector<8x1xf32>
    %4 = arith.divf %2, %3 : vector<8x1xf32>
    %5 = vector.broadcast %4 : vector<8x1xf32> to vector<8x128xf32>
    %6 = arith.subf %0, %5 : vector<8x128xf32>
    %7 = arith.mulf %6, %6 : vector<8x128xf32>
    %cst_2 = arith.constant dense<0.000000e+00> : vector<8xf32>
    %8 = vector.multi_reduction <add>, %7, %cst_2 [1] : vector<8x128xf32> to vector<8xf32>
    %9 = vector.shape_cast %8 : vector<8xf32> to vector<8x1xf32>
    %cst_3 = arith.constant 1.280000e+02 : f32
    %10 = vector.broadcast %cst_3 : f32 to vector<8x1xf32>
    %11 = arith.divf %9, %10 : vector<8x1xf32>
    %cst_4 = arith.constant 9.99999974E-6 : f32
    %12 = vector.broadcast %cst_4 : f32 to vector<8x1xf32>
    %13 = arith.addf %11, %12 : vector<8x1xf32>
    %14 = math.rsqrt %13 : vector<8x1xf32>
    %15 = vector.broadcast %14 : vector<8x1xf32> to vector<8x128xf32>
    %16 = arith.mulf %6, %15 : vector<8x128xf32>
    %c0_5 = arith.constant 0 : index
    %c0_6 = arith.constant 0 : index
    %17 = vector.load %arg2[%c0_5, %c0_6] : memref<1x128xf32, #tpu.memory_space<vmem>>, vector<1x128xf32>
    %18 = vector.broadcast %17 : vector<1x128xf32> to vector<8x128xf32>
    %19 = arith.mulf %16, %18 : vector<8x128xf32>
    %c0_7 = arith.constant 0 : index
    %c0_8 = arith.constant 0 : index
    %20 = vector.load %arg3[%c0_7, %c0_8] : memref<1x128xf32, #tpu.memory_space<vmem>>, vector<1x128xf32>
    %21 = vector.broadcast %20 : vector<1x128xf32> to vector<8x128xf32>
    %22 = arith.addf %19, %21 : vector<8x128xf32>
    %23 = arith.truncf %22 : vector<8x128xf32> to vector<8x128xbf16>
    %c0_9 = arith.constant 0 : index
    %c0_10 = arith.constant 0 : index
    %24 = vector.load %arg4[%c0_9, %c0_10] : memref<128x128xbf16, #tpu.memory_space<vmem>>, vector<128x128xbf16>
    %cst_11 = arith.constant dense<0.000000e+00> : vector<8x128xf32>
    %25 = tpu.matmul %23, %24, %cst_11 {dimension_numbers = #tpu.dot_dimension_numbers<[1], [0], [0], [1], [0, 0, 1, 1], [], []>} : vector<8x128xbf16>, vector<128x128xbf16>, vector<8x128xf32> -> vector<8x128xf32>
    %c0_12 = arith.constant 0 : index
    %c0_13 = arith.constant 0 : index
    %26 = vector.load %arg5[%c0_12, %c0_13] : memref<1x128xf32, #tpu.memory_space<vmem>>, vector<1x128xf32>
    %27 = vector.broadcast %26 : vector<1x128xf32> to vector<8x128xf32>
    %28 = arith.addf %25, %27 : vector<8x128xf32>
    %cst_14 = arith.constant 5.000000e-01 : f32
    %29 = vector.broadcast %cst_14 : f32 to vector<8x128xf32>
    %30 = arith.mulf %29, %28 : vector<8x128xf32>
    %cst_15 = arith.constant 0.707106769 : f32
    %31 = vector.broadcast %cst_15 : f32 to vector<8x128xf32>
    %32 = arith.mulf %28, %31 : vector<8x128xf32>
    %33 = math.absf %32 : vector<8x128xf32>
    %cst_16 = arith.constant 0.327591091 : f32
    %34 = vector.broadcast %cst_16 : f32 to vector<8x128xf32>
    %35 = arith.mulf %34, %33 : vector<8x128xf32>
    %cst_17 = arith.constant 1.000000e+00 : f32
    %36 = vector.broadcast %cst_17 : f32 to vector<8x128xf32>
    %37 = arith.addf %36, %35 : vector<8x128xf32>
    %cst_18 = arith.constant 1.000000e+00 : f32
    %38 = vector.broadcast %cst_18 : f32 to vector<8x128xf32>
    %39 = arith.divf %38, %37 : vector<8x128xf32>
    %cst_19 = arith.constant 1.06140542 : f32
    %40 = vector.broadcast %cst_19 : f32 to vector<8x128xf32>
    %41 = arith.mulf %39, %40 : vector<8x128xf32>
    %cst_20 = arith.constant -1.45315206 : f32
    %42 = vector.broadcast %cst_20 : f32 to vector<8x128xf32>
    %43 = arith.addf %42, %41 : vector<8x128xf32>
    %44 = arith.mulf %39, %43 : vector<8x128xf32>
    %cst_21 = arith.constant 1.42141378 : f32
    %45 = vector.broadcast %cst_21 : f32 to vector<8x128xf32>
    %46 = arith.addf %45, %44 : vector<8x128xf32>
    %47 = arith.mulf %39, %46 : vector<8x128xf32>
    %cst_22 = arith.constant -0.284496725 : f32
    %48 = vector.broadcast %cst_22 : f32 to vector<8x128xf32>
    %49 = arith.addf %48, %47 : vector<8x128xf32>
    %50 = arith.mulf %39, %49 : vector<8x128xf32>
    %cst_23 = arith.constant 0.254829586 : f32
    %51 = vector.broadcast %cst_23 : f32 to vector<8x128xf32>
    %52 = arith.addf %51, %50 : vector<8x128xf32>
    %53 = arith.mulf %39, %52 : vector<8x128xf32>
    %cst_24 = arith.constant 0.000000e+00 : f32
    %54 = vector.broadcast %cst_24 : f32 to vector<8x128xf32>
    %55 = arith.subf %54, %33 : vector<8x128xf32>
    %56 = arith.mulf %55, %33 : vector<8x128xf32>
    %57 = math.exp %56 : vector<8x128xf32>
    %58 = arith.mulf %53, %57 : vector<8x128xf32>
    %cst_25 = arith.constant 1.000000e+00 : f32
    %59 = vector.broadcast %cst_25 : f32 to vector<8x128xf32>
    %60 = arith.subf %59, %58 : vector<8x128xf32>
    %cst_26 = arith.constant 0.000000e+00 : f32
    %61 = vector.broadcast %cst_26 : f32 to vector<8x128xf32>
    %62 = arith.cmpf olt, %32, %61 : vector<8x128xf32>
    %cst_27 = arith.constant 0.000000e+00 : f32
    %63 = vector.broadcast %cst_27 : f32 to vector<8x128xf32>
    %64 = arith.subf %63, %60 : vector<8x128xf32>
    %65 = arith.select %62, %64, %60 : vector<8x128xi1>, vector<8x128xf32>
    %cst_28 = arith.constant 1.000000e+00 : f32
    %66 = vector.broadcast %cst_28 : f32 to vector<8x128xf32>
    %67 = arith.addf %66, %65 : vector<8x128xf32>
    %68 = arith.mulf %30, %67 : vector<8x128xf32>
    %c0_29 = arith.constant 0 : index
    %c0_30 = arith.constant 0 : index
    %69 = vector.load %arg6[%c0_29, %c0_30] : memref<8x128xf32, #tpu.memory_space<vmem>>, vector<8x128xf32>
    tpu.vector_store %arg6[%c0_29, %c0_30], %68 {strides = array<i32>} : memref<8x128xf32, #tpu.memory_space<vmem>>, vector<8x128xf32>,
    return
  }
  func.func @transform_0(%arg0: i32) -> (i32, i32) {
    %c0_i32 = arith.constant 0 : i32
    %c0_i32_0 = arith.constant 0 : i32
    return %arg0, %c0_i32 : i32, i32
  }
  func.func @transform_1(%arg0: i32) -> (i32, i32) {
    %c0_i32 = arith.constant 0 : i32
    %c0_i32_0 = arith.constant 0 : i32
    %c0_i32_1 = arith.constant 0 : i32
    return %c0_i32, %c0_i32_0 : i32, i32
  }
  func.func @transform_2(%arg0: i32) -> (i32, i32) {
    %c0_i32 = arith.constant 0 : i32
    %c0_i32_0 = arith.constant 0 : i32
    %c0_i32_1 = arith.constant 0 : i32
    return %c0_i32, %c0_i32_0 : i32, i32
  }
  func.func @transform_3(%arg0: i32) -> (i32, i32) {
    %c0_i32 = arith.constant 0 : i32
    %c0_i32_0 = arith.constant 0 : i32
    %c0_i32_1 = arith.constant 0 : i32
    return %c0_i32, %c0_i32_0 : i32, i32
  }
  func.func @transform_4(%arg0: i32) -> (i32, i32) {
    %c0_i32 = arith.constant 0 : i32
    %c0_i32_0 = arith.constant 0 : i32
    %c0_i32_1 = arith.constant 0 : i32
    return %c0_i32, %c0_i32_0 : i32, i32
  }
  func.func @transform_5(%arg0: i32) -> (i32, i32) {
    %c0_i32 = arith.constant 0 : i32
    %c0_i32_0 = arith.constant 0 : i32
    return %arg0, %c0_i32 : i32, i32
  }
}

module attributes {stable_mosaic.version = 11 : i64} {
  func.func @kernel(%arg0: i32, %arg1: memref<4x128xf32, #tpu.memory_space<vmem>>, %arg2: memref<1x128xf32, #tpu.memory_space<vmem>>, %arg3: memref<1x128xf32, #tpu.memory_space<vmem>>, %arg4: memref<128x384xbf16, #tpu.memory_space<vmem>>, %arg5: memref<4x384xf32, #tpu.memory_space<vmem>>) attributes {dimension_semantics = [#tpu.dimension_semantics<parallel>], iteration_bounds = array<i64: 1>, scalar_prefetch = 0 : i64, scratch_operands = 0 : i64, tpu.core_type = #tpu.core_type<tc>, window_params = [{transform_indices = @transform_0, window_bounds = array<i64: 4, 128>}, {pipeline_mode = #tpu.pipeline_mode<synchronous>, transform_indices = @transform_1, window_bounds = array<i64: 1, 128>}, {pipeline_mode = #tpu.pipeline_mode<synchronous>, transform_indices = @transform_2, window_bounds = array<i64: 1, 128>}, {pipeline_mode = #tpu.pipeline_mode<synchronous>, transform_indices = @transform_3, window_bounds = array<i64: 128, 384>}, {transform_indices = @transform_4, window_bounds = array<i64: 4, 384>}]} {
    %c0 = arith.constant 0 : index
    %c0_0 = arith.constant 0 : index
    %0 = vector.load %arg1[%c0, %c0_0] : memref<4x128xf32, #tpu.memory_space<vmem>>, vector<4x128xf32>
    %cst = arith.constant dense<0.000000e+00> : vector<4xf32>
    %1 = vector.multi_reduction <add>, %0, %cst [1] : vector<4x128xf32> to vector<4xf32>
    %2 = vector.shape_cast %1 : vector<4xf32> to vector<4x1xf32>
    %cst_1 = arith.constant 1.280000e+02 : f32
    %3 = vector.broadcast %cst_1 : f32 to vector<4x1xf32>
    %4 = arith.divf %2, %3 : vector<4x1xf32>
    %5 = vector.broadcast %4 : vector<4x1xf32> to vector<4x128xf32>
    %6 = arith.subf %0, %5 : vector<4x128xf32>
    %7 = arith.mulf %6, %6 : vector<4x128xf32>
    %cst_2 = arith.constant dense<0.000000e+00> : vector<4xf32>
    %8 = vector.multi_reduction <add>, %7, %cst_2 [1] : vector<4x128xf32> to vector<4xf32>
    %9 = vector.shape_cast %8 : vector<4xf32> to vector<4x1xf32>
    %cst_3 = arith.constant 1.280000e+02 : f32
    %10 = vector.broadcast %cst_3 : f32 to vector<4x1xf32>
    %11 = arith.divf %9, %10 : vector<4x1xf32>
    %cst_4 = arith.constant 9.99999974E-6 : f32
    %12 = vector.broadcast %cst_4 : f32 to vector<4x1xf32>
    %13 = arith.addf %11, %12 : vector<4x1xf32>
    %14 = math.rsqrt %13 : vector<4x1xf32>
    %15 = vector.broadcast %14 : vector<4x1xf32> to vector<4x128xf32>
    %16 = arith.mulf %6, %15 : vector<4x128xf32>
    %c0_5 = arith.constant 0 : index
    %c0_6 = arith.constant 0 : index
    %17 = vector.load %arg2[%c0_5, %c0_6] : memref<1x128xf32, #tpu.memory_space<vmem>>, vector<1x128xf32>
    %18 = vector.broadcast %17 : vector<1x128xf32> to vector<4x128xf32>
    %19 = arith.mulf %16, %18 : vector<4x128xf32>
    %c0_7 = arith.constant 0 : index
    %c0_8 = arith.constant 0 : index
    %20 = vector.load %arg3[%c0_7, %c0_8] : memref<1x128xf32, #tpu.memory_space<vmem>>, vector<1x128xf32>
    %21 = vector.broadcast %20 : vector<1x128xf32> to vector<4x128xf32>
    %22 = arith.addf %19, %21 : vector<4x128xf32>
    %23 = arith.truncf %22 : vector<4x128xf32> to vector<4x128xbf16>
    %c0_9 = arith.constant 0 : index
    %c0_10 = arith.constant 0 : index
    %24 = vector.load %arg4[%c0_9, %c0_10] : memref<128x384xbf16, #tpu.memory_space<vmem>>, vector<128x384xbf16>
    %cst_11 = arith.constant dense<0.000000e+00> : vector<4x384xf32>
    %25 = tpu.matmul %23, %24, %cst_11 {dimension_numbers = #tpu.dot_dimension_numbers<[1], [0], [0], [1], [0, 0, 1, 1], [], []>} : vector<4x128xbf16>, vector<128x384xbf16>, vector<4x384xf32> -> vector<4x384xf32>
    %c0_12 = arith.constant 0 : index
    %c0_13 = arith.constant 0 : index
    %26 = vector.load %arg5[%c0_12, %c0_13] : memref<4x384xf32, #tpu.memory_space<vmem>>, vector<4x384xf32>
    tpu.vector_store %arg5[%c0_12, %c0_13], %25 {strides = array<i32>} : memref<4x384xf32, #tpu.memory_space<vmem>>, vector<4x384xf32>,
    return
  }
  func.func @transform_0(%arg0: i32) -> (i32, i32) {
    %c0_i32 = arith.constant 0 : i32
    %c0_i32_0 = arith.constant 0 : i32
    return %arg0, %c0_i32 : i32, i32
  }
  func.func @transform_1(%arg0: i32) -> (i32, i32) {
    %c0_i32 = arith.constant 0 : i32
    %c0_i32_0 = arith.constant 0 : i32
    %c0_i32_1 = arith.constant 0 : i32
    return %c0_i32, %c0_i32_0 : i32, i32
  }
  func.func @transform_2(%arg0: i32) -> (i32, i32) {
    %c0_i32 = arith.constant 0 : i32
    %c0_i32_0 = arith.constant 0 : i32
    %c0_i32_1 = arith.constant 0 : i32
    return %c0_i32, %c0_i32_0 : i32, i32
  }
  func.func @transform_3(%arg0: i32) -> (i32, i32) {
    %c0_i32 = arith.constant 0 : i32
    %c0_i32_0 = arith.constant 0 : i32
    %c0_i32_1 = arith.constant 0 : i32
    return %c0_i32, %c0_i32_0 : i32, i32
  }
  func.func @transform_4(%arg0: i32) -> (i32, i32) {
    %c0_i32 = arith.constant 0 : i32
    %c0_i32_0 = arith.constant 0 : i32
    return %arg0, %c0_i32 : i32, i32
  }
}

</mosaic_0001>

<bundles_post_ra>
// kernel: _lambda_.8
= control target key start
LH: loop header
LB: loop body
LE: loop exit
PB: predicated region body
PF: predicated region fallthrough
CT: control target
= control target key end

     0   :  { %s1156_s15 = smov 0   ;;  %s1158_s16 = smov 0   ;;  %s1456_s0 = inlined_call_operand.vmem [shape: f32[84,128], index: 0, kind: input, shape index: {}]   ;;  %s1457_s1 = inlined_call_operand.vmem [shape: f32[1,128], index: 1, kind: input, shape index: {}]   ;;  %s1458_s2 = inlined_call_operand.vmem [shape: f32[1,128], index: 2, kind: input, shape index: {}]   ;;  %s1459_s3 = inlined_call_operand.vmem [shape: bf16[128,384], index: 3, kind: input, shape index: {}]   ;;  %s1460_s4 = inlined_call_operand.vmem [shape: f32[84,384], index: 4, kind: output, shape index: {}]  }
   0x1   :  { %s1160_s17 = smov 0  }
   0x2 LB: > { %s1169_s18 = sadd.s32 4294967295, %s1094_s17   ;;  %s1171_s19 = sadd.s32 1, %s1094_s17   ;;  %s1094_s17 = sphi %s1160_s17, %s1468_s17   ;;  %s1090_s16 = sphi %s1158_s16, %s1467_s16   ;;  %s1086_s15 = sphi %s1156_s15, %s1466_s15  }
   0x3   : > { %s107_s20 = ssub.s32 %s1094_s17, %s1171_s19  ;;  %s110_s21 = sadd.s32 1, %s1090_s16 }
   0x4   : > { %p108_p0 = scmp.eq.s32.totalorder %s107_s20, 0  ;;  %p120_p1 = scmp.ne.s32.totalorder %s1090_s16, %s1086_s15 }
   0x5   : > { %p121_p2 = scmp.eq.s32.totalorder %s1169_s18, 1  ;;  %p819_p3 = scmp.ge.s32.totalorder %s1094_s17, 1 }
   0x6   : > { %s1179_s22 = scalar_select %p108_p0, %s1090_s16, %s110_s21  }
   0x7   : > { %p1181_p4 = por %p121_p2, %p120_p1  ;;  %p171_p5 = scmp.lt.s32.totalorder %s1094_s17, 3 }
   0x9   : > { %p172_p6 = pnand %p819_p3, %p171_p5 }
   0xa   : > { %s1186_s24 = smul.u32 (!%p172_p6), 6, %s1169_s18 }
   0xb   : > { %175 = sbr.rel (%p172_p6) target bundleno = 605 (0x25d), region = 36 }
   0xc   : > { %p205_p7 = scmp.lt.s32.totalorder (!%p172_p6), %s1186_s24, 10 }
  0x10   : > { %s206_s25 = scalar_select %p205_p7, %s1186_s24, 10  ;;  %v992_v6 = vld [vmem:[%s1459_s3 + $0xac] ss:$12 sps:$4 sm:$0xff]   ;;  %v994_v7 = vld [vmem:[%s1459_s3 + $0xa8] ss:$12 sps:$4 sm:$0xff]   ;;  %v1128_v8 = vmov 0.0  }
  0x11   : > { %869 = vmatprep.subr.bf16.mxu1 %v1128_v8  ;;  %v995_v9 = vld [vmem:[%s1459_s3 + $0xb0] ss:$12 sps:$4 sm:$0xff]   ;;  %483 = vmatprep.subr.bf16.mxu0 %v992_v6  ;;  %v996_v34 = vld [vmem:[%s1459_s3 + $0x94] ss:$12 sps:$4 sm:$0xff]   ;;  %v999_v36 = vld [vmem:[%s1459_s3 + $0x98] ss:$12 sps:$4 sm:$0xff]  }
  0x12   : > { %s820_s26 = sshll.u32 %s206_s25, 3  ;;  %484 = vmatpush1.bf16.msra.mxu0 %v994_v7  ;;  %870 = vmatpush3.bf16.msra.mxu1 %v995_v9  ;;  %v998_v35 = vld [vmem:[%s1459_s3 + $0x90] ss:$12 sps:$4 sm:$0xff]   ;;  %v1002_v38 = vld [vmem:[%s1459_s3 + $0x78] ss:$12 sps:$4 sm:$0xff]   ;;  %v1129_v53 = vmov 0  }
  0x13   : > { %s208_s29 = scalar_lea.vmem %s1456_s0, %s820_s26  ;;  %871 = vmatprep.subr.bf16.mxu1 %v1128_v8  ;;  %485 = vmatprep.subr.bf16.mxu0 %v996_v34  ;;  %v1000_v37 = vld [vmem:[%s1459_s3 + $0x7c] ss:$12 sps:$4 sm:$0xff]   ;;  %v1003_v39 = vld [vmem:[%s1459_s3 + $0x80] ss:$12 sps:$4 sm:$0xff]   ;;  %v1004_v40 = vld [vmem:[%s1459_s3 + $0x64] ss:$12 sps:$4 sm:$0xff]  }
  0x14   : > { %v221_v0 = vld [vmem:[%s208_s29] sm:$0xff]  ;;  %v223_v1 = vld [vmem:[%s208_s29 + $0x10] sm:$0xff]  ;;  %v222_v2 = vld [vmem:[%s208_s29 + $0x8] sm:$0xff]  ;;  %515 = vmatprep.mubr.bf16.mxu0 %v1129_v53  ;;  %vm1130_vm0 = vmmov 0   ;;  %s197_s25 = sand.u32 1, %s1086_s15   ;;  %s629_s15 = ssub.s32 (%p1181_p4), 11, %s1186_s24 }
  0x15   : > { %227 = vadd.xlane.f32.xlu0 %v221_v0  ;;  %231 = vadd.xlane.f32.xlu1 %v223_v1  ;;  %v224_v3 = vld [vmem:[%s208_s29 + $0x18] sm:$0xff]  ;;  %v225_v4 = vld [vmem:[%s208_s29 + $0x20] sm:$0xff]  ;;  %v226_v5 = vld [vmem:[%s208_s29 + $0x28] sm:$0xff]  ;;  %s897_s26 = smul.u32 144, %s197_s25  ;;  %p630_p8 = scmp.lt.s32.totalorder (%p1181_p4), %s629_s15, 6 }
  0x16   : > { %486 = vmatpush1.bf16.msra.mxu0 %v998_v35  ;;  %872 = vmatpush3.bf16.msra.mxu1 %v999_v36  ;;  %v1006_v41 = vld [vmem:[%s1459_s3 + $0x60] ss:$12 sps:$4 sm:$0xff]   ;;  %v1007_v42 = vld [vmem:[%s1459_s3 + $0x68] ss:$12 sps:$4 sm:$0xff]   ;;  %v1011_v45 = vld [vmem:[%s1459_s3 + $0x50] ss:$12 sps:$4 sm:$0xff]  }
  0x17   : > { %873 = vmatprep.subr.bf16.mxu1 %v1128_v8  ;;  %487 = vmatprep.subr.bf16.mxu0 %v1000_v37  ;;  %v1008_v43 = vld [vmem:[%s1459_s3 + $0x4c] ss:$12 sps:$4 sm:$0xff]   ;;  %v1010_v44 = vld [vmem:[%s1459_s3 + $0x48] ss:$12 sps:$4 sm:$0xff]   ;;  %v1014_v47 = vld [vmem:[%s1459_s3 + $0x30] ss:$12 sps:$4 sm:$0xff]  }
  0x18   : > { %v1012_v46 = vld [vmem:[%s1459_s3 + $0x34] ss:$12 sps:$4 sm:$0xff]   ;;  %v1015_v48 = vld [vmem:[%s1459_s3 + $0x38] ss:$12 sps:$4 sm:$0xff]   ;;  %v1016_v49 = vld [vmem:[%s1459_s3 + $0x1c] ss:$12 sps:$4 sm:$0xff]   ;;  %885 = vmatprep.mubr.msk.bf16.mxu1 %vm1130_vm0, %v1128_v8 }
  0x19   : > { %229 = vadd.xlane.f32.xlu0 %v222_v2  ;;  %233 = vadd.xlane.f32.xlu1 %v224_v3  ;;  %v1018_v50 = vld [vmem:[%s1459_s3 + $0x18] ss:$12 sps:$4 sm:$0xff]   ;;  %v1019_v51 = vld [vmem:[%s1459_s3 + $0x20] ss:$12 sps:$4 sm:$0xff]   ;;  %v1023_v55 = vld [vmem:[%s1459_s3 + $0x8] ss:$12 sps:$4 sm:$0xff]  }
  0x1a   : > { %488 = vmatpush1.bf16.msra.mxu0 %v1002_v38  ;;  %874 = vmatpush3.bf16.msra.mxu1 %v1003_v39  ;;  %v1020_v52 = vld [vmem:[%s1459_s3 + $0x4] ss:$12 sps:$4 sm:$0xff]   ;;  %v1022_v54 = vld [vmem:[%s1459_s3] ss:$12 sps:$4 sm:$0xff]   ;;  %s1319_s27 = scalar_lea.vmem [#allocation2], %s897_s26   ;;  %s899_s28 = smul.u32 (%p1181_p4), 144, %s1169_s18 }
  0x1b   : > { %875 = vmatprep.subr.bf16.mxu1 %v1128_v8  ;;  %489 = vmatprep.subr.bf16.mxu0 %v1004_v40 }
  0x1c   : > { %s1346_s5 = scalar_lea.vmem (%p1181_p4), %s1460_s4, %s899_s28  }
  0x1d   : > { %235 = vadd.xlane.f32.xlu0 %v225_v4  ;;  %237 = vadd.xlane.f32.xlu1 %v226_v5 }
  0x1e   : > { %490 = vmatpush1.bf16.msra.mxu0 %v1006_v41  ;;  %876 = vmatpush3.bf16.msra.mxu1 %v1007_v42 }
  0x1f   : > { %877 = vmatprep.subr.bf16.mxu1 %v1128_v8  ;;  %491 = vmatprep.subr.bf16.mxu0 %v1008_v43 }
  0x22   : > { %492 = vmatpush1.bf16.msra.mxu0 %v1010_v44  ;;  %878 = vmatpush3.bf16.msra.mxu1 %v1011_v45 }
  0x23   : > { %879 = vmatprep.subr.bf16.mxu1 %v1128_v8  ;;  %493 = vmatprep.subr.bf16.mxu0 %v1012_v46 }
  0x26   : > { %494 = vmatpush1.bf16.msra.mxu0 %v1014_v47  ;;  %880 = vmatpush3.bf16.msra.mxu1 %v1015_v48 }
  0x27   : > { %495 = vmatprep.subr.bf16.mxu0 %v1016_v49  ;;  %881 = vmatprep.subr.bf16.mxu1 %v1128_v8 }
  0x2a   : > { %496 = vmatpush1.bf16.msra.mxu0 %v1018_v50  ;;  %882 = vmatpush3.bf16.msra.mxu1 %v1019_v51 }
  0x2b   : > { %497 = vmatprep.subr.bf16.mxu0 %v1020_v52  ;;  %883 = vmatprep.subr.bf16.mxu1 %v1128_v8 }
  0x2e   : > { %498 = vmatpush1.bf16.msra.mxu0 %v1022_v54  ;;  %884 = vmatpush3.bf16.msra.mxu1 %v1023_v55 }
  0x9e   : > { %v228_v10 = vpop.xlane.xlu0 %227  ;;  %v232_v11 = vpop.xlane.xlu1 %231 }
  0x9f   : > { %v240_v12 = vmul.f32 0.0078125, %v228_v10  ;;  %v242_v13 = vmul.f32 0.0078125, %v232_v11 }
  0xa1   : > { %v1204_v14 = vsub.f32 %v221_v0, %v240_v12  ;;  %v1206_v15 = vsub.f32 %v223_v1, %v242_v13  ;;  %v821_v13 = vld [vmem:[%s1457_s1] ss:$0 sm:$0xff] }
  0xa2   : > { %v230_v16 = vpop.xlane.xlu0 %229  ;;  %v234_v17 = vpop.xlane.xlu1 %233 }
  0xa3   : > { %v241_v18 = vmul.f32 0.0078125, %v230_v16  ;;  %v252_v19 = vmul.f32 %v1204_v14, %v1204_v14  ;;  %v243_v20 = vmul.f32 0.0078125, %v234_v17  ;;  %v254_v23 = vmul.f32 %v1206_v15, %v1206_v15 }
  0xa5   : > { %v1210_v21 = vsub.f32 %v222_v2, %v241_v18  ;;  %258 = vadd.xlane.f32.xlu0 %v252_v19  ;;  %v1212_v22 = vsub.f32 %v224_v3, %v243_v20  ;;  %v822_v20 = vld [vmem:[%s1458_s2] ss:$0 sm:$0xff] }
  0xa6   : > { %v236_v24 = vpop.xlane.xlu0 %235  ;;  %v238_v25 = vpop.xlane.xlu1 %237 }
  0xa7   : > { %v244_v26 = vmul.f32 0.0078125, %v236_v24  ;;  %v253_v27 = vmul.f32 %v1210_v21, %v1210_v21  ;;  %v245_v28 = vmul.f32 0.0078125, %v238_v25  ;;  %v255_v31 = vmul.f32 %v1212_v22, %v1212_v22 }
  0xa9   : > { %v1218_v29 = vsub.f32 %v225_v4, %v244_v26  ;;  %262 = vadd.xlane.f32.xlu0 %v254_v23  ;;  %260 = vadd.xlane.f32.xlu1 %v253_v27  ;;  %v1220_v30 = vsub.f32 %v226_v5, %v245_v28 }
  0xab   : > { %v256_v32 = vmul.f32 %v1218_v29, %v1218_v29  ;;  %v257_v33 = vmul.f32 %v1220_v30, %v1220_v30 }
  0xad   : > { %264 = vadd.xlane.f32.xlu1 %v255_v31  ;;  %266 = vadd.xlane.f32.xlu0 %v256_v32 }
  0xb1   : > { %268 = vadd.xlane.f32.xlu1 %v257_v33 }
 0x12e   : > { %v259_v56 = vpop.xlane.xlu0 %258 }
 0x12f   : > { %v270_v57 = vmul.f32 0.0078125, %v259_v56 }
 0x131   : > { %v276_v58 = vadd.f32 1e-05, %v270_v57 }
 0x132   : > { %v261_v59 = vpop.xlane.xlu1 %260  ;;  %v263_v60 = vpop.xlane.xlu0 %262 }
 0x133   : > { %1024 = vrsqrt.f32 %v276_v58  ;;  %v271_v61 = vmul.f32 0.0078125, %v261_v59  ;;  %v272_v62 = vmul.f32 0.0078125, %v263_v60 }
 0x135   : > { %v277_v63 = vadd.f32 1e-05, %v271_v61  ;;  %v278_v0 = vadd.f32 1e-05, %v272_v62 }
 0x136   : > { %v265_v1 = vpop.xlane.xlu1 %264  ;;  %v267_v2 = vpop.xlane.xlu0 %266 }
 0x137   : > { %1026 = vrsqrt.f32 %v277_v63  ;;  %v273_v3 = vmul.f32 0.0078125, %v265_v1  ;;  %v274_v5 = vmul.f32 0.0078125, %v267_v2 }
 0x138   : > { %1028 = vrsqrt.f32 %v278_v0 }
 0x139   : > { %v279_v4 = vadd.f32 1e-05, %v273_v3  ;;  %v280_v9 = vadd.f32 1e-05, %v274_v5 }
 0x13a   : > { %v269_v6 = vpop.xlane.xlu1 %268 }
 0x13b   : > { %1030 = vrsqrt.f32 %v279_v4  ;;  %v275_v7 = vmul.f32 0.0078125, %v269_v6 }
 0x13d   : > { %v281_v10 = vadd.f32 1e-05, %v275_v7 }
 0x13f   : > { %1032 = vrsqrt.f32 %v281_v10 }
 0x140   : > { %v1025_v11 = vpop.eup %1024  ;;  %1034 = vrsqrt.f32 %v280_v9 }
 0x141   : > { %v288_v12 = vmul.f32 %v1025_v11, %v1204_v14 }
 0x143   : > { %v301_v18 = vmul.f32 %v821_v13, %v288_v12 }
 0x144   : > { %v1027_v16 = vpop.eup %1026 }
 0x145   : > { %v289_v17 = vmul.f32 %v1027_v16, %v1210_v21  ;;  %v1029_v19 = vpop.eup %1028  ;;  %v314_v25 = vadd.f32 %v822_v20, %v301_v18 }
 0x146   : > { %v290_v27 = vmul.f32 %v1029_v19, %v1206_v15 }
 0x147   : > { %v302_v23 = vmul.f32 %v821_v13, %v289_v17 }
 0x148   : > { %v1031_v24 = vpop.eup %1030  ;;  %v303_v21 = vmul.f32 %v821_v13, %v290_v27 }
 0x149   : > { %v315_v26 = vadd.f32 %v822_v20, %v302_v23  ;;  %v291_v14 = vmul.f32 %v1031_v24, %v1212_v22 }
 0x14a   : > { %v316_v36 = vadd.f32 %v822_v20, %v303_v21 }
 0x14b   : > { %v320_v28 = vpack.c.bf16 %v315_v26, %v314_v25  ;;  %v304_v31 = vmul.f32 %v821_v13, %v291_v14 }
 0x14c   : > { %v1033_v32 = vpop.eup %1032 }
 0x14d   : > { %516 = vmatmul.mubr.bf16.vlgmr.msra.gmra.mxu0 %v320_v28  ;;  %886 = vmatmul.mubr.bf16.vlgmr.msra.gmra.mxu1 %v320_v28  ;;  %v1035_v33 = vpop.eup %1034  ;;  %v317_v34 = vadd.f32 %v822_v20, %v304_v31  ;;  %v293_v35 = vmul.f32 %v1033_v32, %v1220_v30 }
 0x14e   : > { %525 = vmatprep.mubr.bf16.mxu0 %v1129_v53  ;;  %889 = vmatprep.mubr.msk.bf16.mxu1 %vm1130_vm0, %v1128_v8  ;;  %v292_v15 = vmul.f32 %v1035_v33, %v1218_v29 }
 0x14f   : > { %v321_v22 = vpack.c.bf16 %v317_v34, %v316_v36  ;;  %v306_v37 = vmul.f32 %v821_v13, %v293_v35 }
 0x150   : > { %v305_v38 = vmul.f32 %v821_v13, %v292_v15 }
 0x151   : > { %v319_v39 = vadd.f32 %v822_v20, %v306_v37 }
 0x152   : > { %v318_v40 = vadd.f32 %v822_v20, %v305_v38 }
 0x154   : > { %v322_v41 = vpack.c.bf16 %v319_v39, %v318_v40 }
 0x155   : > { %526 = vmatmul.mubr.bf16.gmra.mxu0 %v321_v22  ;;  %890 = vmatmul.mubr.bf16.gmra.mxu1 %v321_v22 }
 0x156   : > { %535 = vmatprep.mubr.bf16.mxu0 %v1129_v53  ;;  %893 = vmatprep.mubr.msk.bf16.mxu1 %vm1130_vm0, %v1128_v8 }
 0x15d   : > { %536 = vmatmul.mubr.bf16.gmra.mxu0 %v322_v41  ;;  %894 = vmatmul.mubr.bf16.gmra.mxu1 %v322_v41 }
 0x20d   : > { %v517_v30 = vpop.f32.mrf.mxu0  ;;  %v580_v42 = vpop.f32.mrf.mxu1 }
 0x20e   : > { %603 = vst [vmem:[%s1319_s27] sm:$0xff] %v517_v30  ;;  %605 = vst [vmem:[%s1319_s27 + $0x10] sm:$0xff] %v580_v42 }
 0x20f   : > { %v519_v8 = vpop.f32.mrf.mxu0  ;;  %v887_v29 = vpop.f32.mrf.mxu1 }
 0x210   : > { %604 = vst [vmem:[%s1319_s27 + $0x8] sm:$0xff] %v519_v8 }
 0x211   : > { %v521_v43 = vpop.f32.mrf.mxu0  ;;  %v583_v44 = vpop.f32.mrf.mxu1 }
 0x212   : > { %606 = vst [vmem:[%s1319_s27 + $0x18] sm:$0xff] %v521_v43  ;;  %608 = vst [vmem:[%s1319_s27 + $0x28] sm:$0xff] %v583_v44 }
 0x213   : > { %v523_v45 = vpop.f32.mrf.mxu0  ;;  %v888_v46 = vpop.f32.mrf.mxu1 }
 0x214   : > { %607 = vst [vmem:[%s1319_s27 + $0x20] sm:$0xff] %v523_v45 }
 0x215   : > { %v527_v47 = vpop.f32.mrf.mxu0  ;;  %v588_v48 = vpop.f32.mrf.mxu1 }
 0x216   : > { %609 = vst [vmem:[%s1319_s27 + $0x30] sm:$0xff] %v527_v47  ;;  %611 = vst [vmem:[%s1319_s27 + $0x40] sm:$0xff] %v588_v48 }
 0x217   : > { %v529_v49 = vpop.f32.mrf.mxu0  ;;  %v891_v50 = vpop.f32.mrf.mxu1 }
 0x218   : > { %610 = vst [vmem:[%s1319_s27 + $0x38] sm:$0xff] %v529_v49 }
 0x219   : > { %v531_v51 = vpop.f32.mrf.mxu0  ;;  %v591_v52 = vpop.f32.mrf.mxu1 }
 0x21a   : > { %612 = vst [vmem:[%s1319_s27 + $0x48] sm:$0xff] %v531_v51  ;;  %614 = vst [vmem:[%s1319_s27 + $0x58] sm:$0xff] %v591_v52 }
 0x21b   : > { %v533_v53 = vpop.f32.mrf.mxu0  ;;  %v892_v54 = vpop.f32.mrf.mxu1 }
 0x21c   : > { %613 = vst [vmem:[%s1319_s27 + $0x50] sm:$0xff] %v533_v53 }
 0x21d   : > { %v537_v55 = vpop.f32.mrf.mxu0  ;;  %v596_v56 = vpop.f32.mrf.mxu1 }
 0x21e   : > { %615 = vst [vmem:[%s1319_s27 + $0x60] sm:$0xff] %v537_v55  ;;  %617 = vst [vmem:[%s1319_s27 + $0x70] sm:$0xff] %v596_v56 }
 0x21f   : > { %v539_v57 = vpop.f32.mrf.mxu0  ;;  %v895_v58 = vpop.f32.mrf.mxu1 }
 0x220   : > { %616 = vst [vmem:[%s1319_s27 + $0x68] sm:$0xff] %v539_v57  ;;  %627 = sbr.rel (!%p1181_p4) target bundleno = 605 (0x25d), region = 40 }
 0x221   : > { %v541_v59 = vpop.f32.mrf.mxu0  ;;  %v599_v60 = vpop.f32.mrf.mxu1 }
 0x222   : > { %618 = vst [vmem:[%s1319_s27 + $0x78] sm:$0xff] %v541_v59  ;;  %620 = vst [vmem:[%s1319_s27 + $0x88] sm:$0xff] %v599_v60 }
 0x223   : > { %v543_v61 = vpop.f32.mrf.mxu0  ;;  %v896_v62 = vpop.f32.mrf.mxu1 }
 0x224   : > { %619 = vst [vmem:[%s1319_s27 + $0x80] sm:$0xff] %v543_v61 }
 0x225   : > { %s1470_s15 = smov (!%p630_p8, %s629_s15), 6 }
 0x226   : > { %s848_s6 = smul.u32 384, %s1470_s15 }
 0x228   : > { %p851_p9 = scmp.eq.s32.totalorder %s848_s6, 0 }
 0x229   : > { %1036 = sdivrem.u32 (!%p851_p9), %s1470_s15, 6 }
 0x22a   : > { %640 = sbr.rel (%p851_p9) target bundleno = 605 (0x25d), region = 44 }
 0x232   : > { %s1352_s23 = spop.drf %1036 }
 0x233   : > { %p852_p10 = scmp.le.s32.totalorder %s1352_s23, 0 }
 0x234   : > { %s1462_s18 = smov (!%p852_p10), %s1346_s5  ;;  %s1463_s24 = smov (!%p852_p10), %s1319_s27 }
 0x235   : > { %772 = sbr.rel (%p852_p10) target bundleno = 580 (0x244), region = 92  ;;  %s1361_s7 = smov (!%p852_p10), 0  }
 0x236   : > { %s1363_s8 = smov (!%p852_p10), 0  }
 0x23a LB: >> { %v654_v63 = vld [vmem:[%s1102_s24] sm:$0xff]  ;;  %v656_v0 = vld [vmem:[%s1102_s24 + $0x18] sm:$0xff]  ;;  %v658_v1 = vld [vmem:[%s1102_s24 + $0x30] sm:$0xff]  ;;  %s690_s9 = sadd.s32 1, %s1106_s7  ;;  %s648_s8 = sadd.s32 1, %s1110_s8   ;;  %s1110_s8 = sphi %s1363_s8, %s648_s8   ;;  %s1106_s7 = sphi %s1361_s7, %s1464_s7   ;;  %s1102_s24 = sphi %s1463_s24, %s695_s24   ;;  %s1098_s18 = sphi %s1462_s18, %s696_s18  }
 0x23b   : >> { %655 = vst [vmem:[%s1098_s18] sm:$0xff] %v654_v63  ;;  %657 = vst [vmem:[%s1098_s18 + $0x18] sm:$0xff] %v656_v0  ;;  %v660_v2 = vld [vmem:[%s1102_s24 + $0x48] sm:$0xff]  ;;  %v662_v3 = vld [vmem:[%s1102_s24 + $0x60] sm:$0xff]  ;;  %p691_p11 = scmp.ge.s32.totalorder %s690_s9, %s1352_s23  ;;  %p647_p12 = scmp.ge.s32.totalorder %s648_s8, %s1352_s23 }
 0x23c   : >> { %659 = vst [vmem:[%s1098_s18 + $0x30] sm:$0xff] %v658_v1  ;;  %v664_v4 = vld [vmem:[%s1102_s24 + $0x78] sm:$0xff]  ;;  %661 = vst [vmem:[%s1098_s18 + $0x48] sm:$0xff] %v660_v2  ;;  %v666_v5 = vld [vmem:[%s1102_s24 + $0x8] sm:$0xff] }
 0x23d   : >> { %663 = vst [vmem:[%s1098_s18 + $0x60] sm:$0xff] %v662_v3  ;;  %665 = vst [vmem:[%s1098_s18 + $0x78] sm:$0xff] %v664_v4  ;;  %v668_v6 = vld [vmem:[%s1102_s24 + $0x20] sm:$0xff]  ;;  %v670_v7 = vld [vmem:[%s1102_s24 + $0x38] sm:$0xff]  ;;  %s1472_s9 = smov (%p691_p11, %s690_s9), 0 }
 0x23e   : >> { %667 = vst [vmem:[%s1098_s18 + $0x8] sm:$0xff] %v666_v5  ;;  %669 = vst [vmem:[%s1098_s18 + $0x20] sm:$0xff] %v668_v6  ;;  %v672_v9 = vld [vmem:[%s1102_s24 + $0x50] sm:$0xff]  ;;  %v674_v10 = vld [vmem:[%s1102_s24 + $0x68] sm:$0xff]  ;;  %s693_s10 = smul.u32 144, %s1472_s9  ;;  %s1464_s7 = smov %s1472_s9 }
 0x23f   : >> { %671 = vst [vmem:[%s1098_s18 + $0x38] sm:$0xff] %v670_v7  ;;  %v676_v11 = vld [vmem:[%s1102_s24 + $0x80] sm:$0xff]  ;;  %673 = vst [vmem:[%s1098_s18 + $0x50] sm:$0xff] %v672_v9  ;;  %v678_v12 = vld [vmem:[%s1102_s24 + $0x10] sm:$0xff]  ;;  %650 = sbr.rel (!%p647_p12) target bundleno = 570 (0x23a), region = 98 }
 0x240   : >> { %675 = vst [vmem:[%s1098_s18 + $0x68] sm:$0xff] %v674_v10  ;;  %677 = vst [vmem:[%s1098_s18 + $0x80] sm:$0xff] %v676_v11  ;;  %v680_v13 = vld [vmem:[%s1102_s24 + $0x28] sm:$0xff]  ;;  %v682_v16 = vld [vmem:[%s1102_s24 + $0x40] sm:$0xff] }
 0x241   : >> { %679 = vst [vmem:[%s1098_s18 + $0x10] sm:$0xff] %v678_v12  ;;  %681 = vst [vmem:[%s1098_s18 + $0x28] sm:$0xff] %v680_v13  ;;  %v684_v17 = vld [vmem:[%s1102_s24 + $0x58] sm:$0xff]  ;;  %v686_v18 = vld [vmem:[%s1102_s24 + $0x70] sm:$0xff] }
 0x242   : >> { %683 = vst [vmem:[%s1098_s18 + $0x40] sm:$0xff] %v682_v16  ;;  %v688_v19 = vld [vmem:[%s1102_s24 + $0x88] sm:$0xff]  ;;  %685 = vst [vmem:[%s1098_s18 + $0x58] sm:$0xff] %v684_v17  ;;  %s695_s24 = scalar_lea.vmem %s1319_s27, %s693_s10 [#allocation2]  }
 0x243   : >> { %687 = vst [vmem:[%s1098_s18 + $0x70] sm:$0xff] %v686_v18  ;;  %689 = vst [vmem:[%s1098_s18 + $0x88] sm:$0xff] %v688_v19  ;;  %s696_s18 = scalar_lea.vmem %s1346_s5, %s693_s10  }
 0x244 PF: > { %1038 = sdivrem.u32 %s1470_s15, 6 }
 0x245   : > { %s853_s11 = smul.u32 144, %s1352_s23 }
 0x247   : > { %s1427_s12 = scalar_lea.vmem %s1319_s27, %s853_s11 [#allocation2]   ;;  %s1430_s13 = scalar_lea.vmem %s1346_s5, %s853_s11  }
 0x24d   : > { %s1432_s14 = spop.drf %1038 }
 0x24e   : > { %p855_p13 = scmp.le.s32.totalorder %s1432_s14, 0 }
 0x24f   : > { %s1465_s17 = smov (!%p855_p13), %s1430_s13  ;;  %s1116_s20 = smov (!%p855_p13), %s1427_s12  }
 0x250   : > { %786 = sbr.rel (%p855_p13) target bundleno = 605 (0x25d), region = 103  ;;  %s1120_s21 = smov (!%p855_p13), 0  }
 0x251   : > { %s1124_s25 = smov (!%p855_p13), 0  }
 0x255 LB: >> { %v713_v20 = vld [vmem:[%s1118_s20] sm:$0xff]  ;;  %v715_v23 = vld [vmem:[%s1118_s20 + $0x8] sm:$0xff]  ;;  %v717_v24 = vld [vmem:[%s1118_s20 + $0x10] sm:$0xff]  ;;  %s719_s26 = sadd.s32 1, %s1122_s21  ;;  %s707_s25 = sadd.s32 1, %s1126_s25   ;;  %s1126_s25 = sphi %s1124_s25, %s707_s25   ;;  %s1122_s21 = sphi %s1120_s21, %s1121_s21   ;;  %s1118_s20 = sphi %s1116_s20, %s724_s20   ;;  %s1114_s17 = sphi %s1465_s17, %s725_s17  }
 0x256   : >> { %714 = vst [vmem:[%s1114_s17] sm:$0xff] %v713_v20  ;;  %716 = vst [vmem:[%s1114_s17 + $0x8] sm:$0xff] %v715_v23  ;;  %p720_p0 = scmp.ge.s32.totalorder %s719_s26, %s1432_s14  ;;  %p706_p1 = scmp.ge.s32.totalorder %s707_s25, %s1432_s14 }
 0x257   : >> { %718 = vst [vmem:[%s1114_s17 + $0x10] sm:$0xff] %v717_v24 }
 0x258   : >> { %s1474_s26 = smov (%p720_p0, %s719_s26), 0  ;;  %709 = sbr.rel (!%p706_p1) target bundleno = 597 (0x255), region = 109 }
 0x259   : >> { %s722_s27 = smul.u32 24, %s1474_s26  ;;  %s1121_s21 = smov %s1474_s26  }
 0x25b   : >> { %s724_s20 = scalar_lea.vmem %s1427_s12, %s722_s27 [#allocation2]   ;;  %s725_s17 = scalar_lea.vmem %s1430_s13, %s722_s27  }
 0x25d PF: > { %p11_p2 = scmp.ge.s32.totalorder %s1171_s19, 4   ;;  %s1466_s15 = smov %s1090_s16 }
 0x25e   : > { %s1467_s16 = smov %s1179_s22  ;;  %s1468_s17 = smov %s1171_s19 }
 0x25f   :  { %13 = sbr.rel (!%p11_p2) target bundleno = 2 (0x2), region = 120 }

// kernel: _lambda_.9
= control target key start
LH: loop header
LB: loop body
LE: loop exit
PB: predicated region body
PF: predicated region fallthrough
CT: control target
= control target key end

     0   :  { %s1227_s18 = smov 0   ;;  %s1229_s19 = smov 0   ;;  %s1483_s0 = inlined_call_operand.vmem [shape: f32[84,128], index: 0, kind: input, shape index: {}]   ;;  %s1484_s1 = inlined_call_operand.vmem [shape: f32[1,128], index: 1, kind: input, shape index: {}]   ;;  %s1485_s2 = inlined_call_operand.vmem [shape: f32[1,128], index: 2, kind: input, shape index: {}]   ;;  %s1486_s3 = inlined_call_operand.vmem [shape: bf16[128,128], index: 3, kind: input, shape index: {}]   ;;  %s1487_s4 = inlined_call_operand.vmem [shape: f32[1,128], index: 4, kind: input, shape index: {}]   ;;  %s1488_s5 = inlined_call_operand.vmem [shape: f32[84,128], index: 5, kind: output, shape index: {}]  }
   0x1   :  { %s1231_s20 = smov 0  }
   0x2 LB: > { %s1240_s21 = sadd.s32 4294967295, %s1161_s20   ;;  %s1242_s22 = sadd.s32 1, %s1161_s20   ;;  %s1161_s20 = sphi %s1231_s20, %s1495_s20   ;;  %s1157_s19 = sphi %s1229_s19, %s1494_s19   ;;  %s1153_s18 = sphi %s1227_s18, %s1493_s18  }
   0x3   : > { %s129_s23 = ssub.s32 %s1161_s20, %s1242_s22  ;;  %s132_s24 = sadd.s32 1, %s1157_s19 }
   0x4   : > { %p130_p0 = scmp.eq.s32.totalorder %s129_s23, 0  ;;  %p142_p1 = scmp.ne.s32.totalorder %s1157_s19, %s1153_s18 }
   0x5   : > { %p143_p2 = scmp.eq.s32.totalorder %s1240_s21, 1  ;;  %p886_p3 = scmp.ge.s32.totalorder %s1161_s20, 1 }
   0x6   : > { %s1250_s25 = scalar_select %p130_p0, %s1157_s19, %s132_s24  }
   0x7   : > { %p1252_p4 = por %p143_p2, %p142_p1  ;;  %p196_p5 = scmp.lt.s32.totalorder %s1161_s20, 3 }
   0x9   : > { %p197_p6 = pnand %p886_p3, %p196_p5 }
   0xa   : > { %s1257_s27 = smul.u32 (!%p197_p6), 6, %s1240_s21  ;;  %s224_s12 = sand.u32 (!%p197_p6), 1, %s1153_s18  }
   0xb   : > { %200 = sbr.rel (%p197_p6) target bundleno = 647 (0x287), region = 40 }
   0xc   : > { %p232_p7 = scmp.lt.s32.totalorder (!%p197_p6), %s1257_s27, 10  ;;  %s967_s13 = smul.u32 (!%p197_p6), 48, %s224_s12 }
   0xe   : > { %s1411_s18 = scalar_lea.vmem (!%p197_p6), [#allocation2], %s967_s13  }
  0x10   : > { %s233_s28 = scalar_select %p232_p7, %s1257_s27, 10  ;;  %v1059_v6 = vld [vmem:[%s1486_s3 + $0x38] sm:$0xff]   ;;  %v1195_v7 = vmov 0.0   ;;  %v1060_v32 = vld [vmem:[%s1486_s3 + $0x30] sm:$0xff]   ;;  %v1061_v33 = vld [vmem:[%s1486_s3 + $0x28] sm:$0xff]   ;;  %vm1196_vm0 = vmmov 0  }
  0x11   : > { %951 = vmatprep.subr.bf16.mxu1 %v1195_v7  ;;  %923 = vmatprep.subr.bf16.mxu0 %v1195_v7  ;;  %v1062_v34 = vld [vmem:[%s1486_s3 + $0x20] sm:$0xff]   ;;  %v1063_v35 = vld [vmem:[%s1486_s3 + $0x18] sm:$0xff]   ;;  %v1064_v36 = vld [vmem:[%s1486_s3 + $0x10] sm:$0xff]   ;;  %s653_s14 = ssub.s32 (%p1252_p4), 11, %s1257_s27  ;;  %s911_s15 = smul.u32 (%p1252_p4), 48, %s1240_s21 }
  0x12   : > { %s887_s29 = sshll.u32 %s233_s28, 3  ;;  %959 = vmatpush3.bf16.msra.mxu1 %v1059_v6  ;;  %924 = vmatpush3.bf16.msra.mxu0 %v1059_v6  ;;  %v1065_v37 = vld [vmem:[%s1486_s3 + $0x8] sm:$0xff]   ;;  %v1066_v38 = vld [vmem:[%s1486_s3] sm:$0xff]   ;;  %p654_p8 = scmp.lt.s32.totalorder (%p1252_p4), %s653_s14, 6 }
  0x13   : > { %s235_s7 = scalar_lea.vmem %s1483_s0, %s887_s29  ;;  %952 = vmatprep.subr.bf16.mxu1 %v1195_v7  ;;  %925 = vmatprep.subr.bf16.mxu0 %v1195_v7  ;;  %v888_v59 = vld [vmem:[%s1484_s1] ss:$0 sm:$0xff]  ;;  %s1434_s20 = scalar_lea.vmem (%p1252_p4), %s1488_s5, %s911_s15  }
  0x14   : > { %v249_v0 = vld [vmem:[%s235_s7 + $0x10] sm:$0xff]  ;;  %v247_v1 = vld [vmem:[%s235_s7] sm:$0xff]  ;;  %v250_v2 = vld [vmem:[%s235_s7 + $0x18] sm:$0xff]  ;;  %943 = vmatprep.mubr.msk.bf16.mxu1 %vm1196_vm0, %v1195_v7  ;;  %939 = vmatprep.mubr.msk.bf16.mxu0 %vm1196_vm0, %v1195_v7 }
  0x15   : > { %257 = vadd.xlane.f32.xlu0 %v249_v0  ;;  %253 = vadd.xlane.f32.xlu1 %v247_v1  ;;  %v248_v3 = vld [vmem:[%s235_s7 + $0x8] sm:$0xff]  ;;  %v251_v4 = vld [vmem:[%s235_s7 + $0x20] sm:$0xff] }
  0x16   : > { %v252_v5 = vld [vmem:[%s235_s7 + $0x28] sm:$0xff]  ;;  %960 = vmatpush3.bf16.msra.mxu1 %v1060_v32  ;;  %926 = vmatpush3.bf16.msra.mxu0 %v1060_v32 }
  0x17   : > { %953 = vmatprep.subr.bf16.mxu1 %v1195_v7  ;;  %927 = vmatprep.subr.bf16.mxu0 %v1195_v7 }
  0x19   : > { %259 = vadd.xlane.f32.xlu0 %v250_v2  ;;  %255 = vadd.xlane.f32.xlu1 %v248_v3 }
  0x1a   : > { %961 = vmatpush3.bf16.msra.mxu1 %v1061_v33  ;;  %928 = vmatpush3.bf16.msra.mxu0 %v1061_v33 }
  0x1b   : > { %954 = vmatprep.subr.bf16.mxu1 %v1195_v7  ;;  %929 = vmatprep.subr.bf16.mxu0 %v1195_v7 }
  0x1d   : > { %261 = vadd.xlane.f32.xlu0 %v251_v4  ;;  %263 = vadd.xlane.f32.xlu1 %v252_v5 }
  0x1e   : > { %962 = vmatpush3.bf16.msra.mxu1 %v1062_v34  ;;  %930 = vmatpush3.bf16.msra.mxu0 %v1062_v34 }
  0x1f   : > { %955 = vmatprep.subr.bf16.mxu1 %v1195_v7  ;;  %931 = vmatprep.subr.bf16.mxu0 %v1195_v7 }
  0x22   : > { %963 = vmatpush3.bf16.msra.mxu1 %v1063_v35  ;;  %932 = vmatpush3.bf16.msra.mxu0 %v1063_v35 }
  0x23   : > { %956 = vmatprep.subr.bf16.mxu1 %v1195_v7  ;;  %933 = vmatprep.subr.bf16.mxu0 %v1195_v7 }
  0x26   : > { %964 = vmatpush3.bf16.msra.mxu1 %v1064_v36  ;;  %934 = vmatpush3.bf16.msra.mxu0 %v1064_v36 }
  0x27   : > { %957 = vmatprep.subr.bf16.mxu1 %v1195_v7  ;;  %935 = vmatprep.subr.bf16.mxu0 %v1195_v7 }
  0x2a   : > { %965 = vmatpush3.bf16.msra.mxu1 %v1065_v37  ;;  %936 = vmatpush3.bf16.msra.mxu0 %v1065_v37 }
  0x2b   : > { %958 = vmatprep.subr.bf16.mxu1 %v1195_v7  ;;  %937 = vmatprep.subr.bf16.mxu0 %v1195_v7 }
  0x2e   : > { %966 = vmatpush3.bf16.msra.mxu1 %v1066_v38  ;;  %938 = vmatpush3.bf16.msra.mxu0 %v1066_v38 }
  0x9e   : > { %v258_v8 = vpop.xlane.xlu0 %257  ;;  %v254_v9 = vpop.xlane.xlu1 %253 }
  0x9f   : > { %v268_v10 = vmul.f32 0.0078125, %v258_v8  ;;  %v266_v11 = vmul.f32 0.0078125, %v254_v9 }
  0xa1   : > { %v1271_v12 = vsub.f32 %v249_v0, %v268_v10  ;;  %v1273_v13 = vsub.f32 %v247_v1, %v266_v11  ;;  %v889_v1 = vld [vmem:[%s1485_s2] ss:$0 sm:$0xff] }
  0xa2   : > { %v260_v14 = vpop.xlane.xlu0 %259  ;;  %v256_v15 = vpop.xlane.xlu1 %255 }
  0xa3   : > { %v269_v16 = vmul.f32 0.0078125, %v260_v14  ;;  %v280_v17 = vmul.f32 %v1271_v12, %v1271_v12  ;;  %v267_v18 = vmul.f32 0.0078125, %v256_v15  ;;  %v278_v21 = vmul.f32 %v1273_v13, %v1273_v13 }
  0xa5   : > { %v1277_v19 = vsub.f32 %v250_v2, %v269_v16  ;;  %288 = vadd.xlane.f32.xlu0 %v280_v17  ;;  %v1279_v20 = vsub.f32 %v248_v3, %v267_v18 }
  0xa6   : > { %v262_v22 = vpop.xlane.xlu0 %261  ;;  %v264_v23 = vpop.xlane.xlu1 %263 }
  0xa7   : > { %v270_v24 = vmul.f32 0.0078125, %v262_v22  ;;  %v281_v25 = vmul.f32 %v1277_v19, %v1277_v19  ;;  %v271_v26 = vmul.f32 0.0078125, %v264_v23  ;;  %v279_v29 = vmul.f32 %v1279_v20, %v1279_v20 }
  0xa9   : > { %v1285_v27 = vsub.f32 %v251_v4, %v270_v24  ;;  %290 = vadd.xlane.f32.xlu1 %v281_v25  ;;  %284 = vadd.xlane.f32.xlu0 %v278_v21  ;;  %v1287_v28 = vsub.f32 %v252_v5, %v271_v26 }
  0xab   : > { %v282_v30 = vmul.f32 %v1285_v27, %v1285_v27  ;;  %v283_v31 = vmul.f32 %v1287_v28, %v1287_v28 }
  0xad   : > { %292 = vadd.xlane.f32.xlu0 %v282_v30  ;;  %286 = vadd.xlane.f32.xlu1 %v279_v29 }
  0xb1   : > { %294 = vadd.xlane.f32.xlu1 %v283_v31 }
 0x12e   : > { %v289_v39 = vpop.xlane.xlu0 %288 }
 0x12f   : > { %v298_v40 = vmul.f32 0.0078125, %v289_v39 }
 0x131   : > { %v304_v41 = vadd.f32 1e-05, %v298_v40 }
 0x132   : > { %v285_v42 = vpop.xlane.xlu0 %284  ;;  %v291_v43 = vpop.xlane.xlu1 %290 }
 0x133   : > { %1067 = vrsqrt.f32 %v304_v41  ;;  %v296_v44 = vmul.f32 0.0078125, %v285_v42  ;;  %v299_v45 = vmul.f32 0.0078125, %v291_v43 }
 0x135   : > { %v302_v46 = vadd.f32 1e-05, %v296_v44  ;;  %v305_v47 = vadd.f32 1e-05, %v299_v45 }
 0x136   : > { %v293_v48 = vpop.xlane.xlu0 %292  ;;  %v287_v49 = vpop.xlane.xlu1 %286 }
 0x137   : > { %1069 = vrsqrt.f32 %v302_v46  ;;  %v300_v50 = vmul.f32 0.0078125, %v293_v48  ;;  %v297_v51 = vmul.f32 0.0078125, %v287_v49 }
 0x138   : > { %1071 = vrsqrt.f32 %v305_v47 }
 0x139   : > { %v306_v52 = vadd.f32 1e-05, %v300_v50  ;;  %v303_v53 = vadd.f32 1e-05, %v297_v51 }
 0x13a   : > { %v295_v54 = vpop.xlane.xlu1 %294 }
 0x13b   : > { %1073 = vrsqrt.f32 %v306_v52  ;;  %v301_v55 = vmul.f32 0.0078125, %v295_v54 }
 0x13c   : > { %1075 = vrsqrt.f32 %v303_v53 }
 0x13d   : > { %v307_v56 = vadd.f32 1e-05, %v301_v55 }
 0x13f   : > { %1077 = vrsqrt.f32 %v307_v56 }
 0x140   : > { %v1068_v57 = vpop.eup %1067 }
 0x141   : > { %v316_v58 = vmul.f32 %v1068_v57, %v1271_v12 }
 0x143   : > { %v329_v63 = vmul.f32 %v888_v59, %v316_v58 }
 0x144   : > { %v1070_v60 = vpop.eup %1069 }
 0x145   : > { %v1072_v61 = vpop.eup %1071  ;;  %v314_v0 = vmul.f32 %v1070_v60, %v1273_v13  ;;  %v342_v6 = vadd.f32 %v889_v1, %v329_v63 }
 0x146   : > { %v317_v62 = vmul.f32 %v1072_v61, %v1277_v19 }
 0x147   : > { %v327_v10 = vmul.f32 %v888_v59, %v314_v0 }
 0x148   : > { %v1074_v2 = vpop.eup %1073  ;;  %v330_v3 = vmul.f32 %v888_v59, %v317_v62 }
 0x149   : > { %v1076_v4 = vpop.eup %1075  ;;  %v318_v5 = vmul.f32 %v1074_v2, %v1285_v27  ;;  %v340_v16 = vadd.f32 %v889_v1, %v327_v10 }
 0x14a   : > { %v343_v8 = vadd.f32 %v889_v1, %v330_v3  ;;  %v315_v9 = vmul.f32 %v1076_v4, %v1279_v20  ;;  %v890_v20 = vld [vmem:[%s1487_s4] ss:$0 sm:$0xff] }
 0x14b   : > { %v331_v13 = vmul.f32 %v888_v59, %v318_v5 }
 0x14c   : > { %v1078_v11 = vpop.eup %1077  ;;  %v347_v12 = vpack.c.bf16 %v343_v8, %v342_v6  ;;  %v328_v14 = vmul.f32 %v888_v59, %v315_v9 }
 0x14d   : > { %v319_v15 = vmul.f32 %v1078_v11, %v1287_v28  ;;  %v344_v21 = vadd.f32 %v889_v1, %v331_v13 }
 0x14e   : > { %944 = vmatmul.mubr.bf16.vlgmr.msra.gmra.mxu1 %v347_v12  ;;  %v341_v17 = vadd.f32 %v889_v1, %v328_v14 }
 0x14f   : > { %947 = vmatprep.mubr.msk.bf16.mxu1 %vm1196_vm0, %v1195_v7  ;;  %v332_v18 = vmul.f32 %v888_v59, %v319_v15 }
 0x150   : > { %v346_v19 = vpack.c.bf16 %v341_v17, %v340_v16 }
 0x151   : > { %v345_v22 = vadd.f32 %v889_v1, %v332_v18 }
 0x152   : > { %940 = vmatmul.mubr.bf16.vlgmr.msra.gmra.mxu0 %v346_v19 }
 0x153   : > { %v348_v23 = vpack.c.bf16 %v345_v22, %v344_v21 }
 0x156   : > { %948 = vmatmul.mubr.bf16.gmra.mxu1 %v348_v23 }
 0x20e   : > { %v462_v24 = vpop.f32.mrf.mxu1 }
 0x20f   : > { %v1349_v25 = vadd.f32 %v890_v20, %v462_v24 }
 0x210   : > { %v945_v26 = vpop.f32.mrf.mxu1 }
 0x211   : > { %v1352_v27 = vmul.f32 0.70710677, %v1349_v25 }
 0x212   : > { %v454_v28 = vpop.f32.mrf.mxu0  ;;  %v465_v7 = vpop.f32.mrf.mxu1 }
 0x213   : > { %v491_v29 = vand.u32 2147483647, %v1352_v27  ;;  %v1355_v30 = vadd.f32 %v890_v20, %v454_v28  ;;  %v1357_v31 = vadd.f32 %v890_v20, %v465_v7  ;;  %vm611_vm1 = vcmp.lt.f32.partialorder %v1352_v27, 0.0 }
 0x214   : > { %v941_v32 = vpop.f32.mrf.mxu0  ;;  %v946_v33 = vpop.f32.mrf.mxu1 }
 0x215   : > { %v497_v34 = vmul.f32 0.3275911, %v491_v29  ;;  %v1360_v35 = vmul.f32 0.70710677, %v1355_v30  ;;  %v1363_v36 = vmul.f32 0.70710677, %v1357_v31 }
 0x216   : > { %v457_v37 = vpop.f32.mrf.mxu0  ;;  %v470_v38 = vpop.f32.mrf.mxu1  ;;  %v575_v56 = vsub.f32 0.0, %v491_v29 }
 0x217   : > { %v503_v39 = vadd.f32 1.0, %v497_v34  ;;  %v489_v40 = vand.u32 2147483647, %v1360_v35  ;;  %v492_v41 = vand.u32 2147483647, %v1363_v36  ;;  %v1367_v42 = vadd.f32 %v890_v20, %v457_v37 }
 0x218   : > { %v942_v43 = vpop.f32.mrf.mxu0  ;;  %v949_v44 = vpop.f32.mrf.mxu1  ;;  %v1369_v46 = vadd.f32 %v890_v20, %v470_v38  ;;  %v581_v62 = vmul.f32 %v575_v56, %v491_v29  ;;  %vm609_vm2 = vcmp.lt.f32.partialorder %v1360_v35, 0.0  ;;  %vm612_vm3 = vcmp.lt.f32.partialorder %v1363_v36, 0.0 }
 0x219   : > { %1079 = vrcp.f32 %v503_v39  ;;  %v495_v45 = vmul.f32 0.3275911, %v489_v40  ;;  %v498_v47 = vmul.f32 0.3275911, %v492_v41  ;;  %v1372_v48 = vmul.f32 0.70710677, %v1367_v42 }
 0x21a   : > { %v473_v49 = vpop.f32.mrf.mxu1  ;;  %v1376_v54 = vmul.f32 0.70710677, %v1369_v46  ;;  %v573_v63 = vsub.f32 0.0, %v489_v40  ;;  %v576_v1 = vsub.f32 0.0, %v492_v41  ;;  %v589_v5 = vmul.f32 1.442695, %v581_v62 }
 0x21b   : > { %v501_v50 = vadd.f32 1.0, %v495_v45  ;;  %v504_v51 = vadd.f32 1.0, %v498_v47  ;;  %v490_v52 = vand.u32 2147483647, %v1372_v48  ;;  %v1378_v55 = vadd.f32 %v890_v20, %v473_v49 }
 0x21c   : > { %v950_v53 = vpop.f32.mrf.mxu1  ;;  %v493_v58 = vand.u32 2147483647, %v1376_v54  ;;  %v579_v6 = vmul.f32 %v573_v63, %v489_v40  ;;  %v582_v10 = vmul.f32 %v576_v1, %v492_v41  ;;  %vm610_vm4 = vcmp.lt.f32.partialorder %v1372_v48, 0.0 }
 0x21d   : > { %1081 = vrcp.f32 %v501_v50  ;;  %v496_v57 = vmul.f32 0.3275911, %v490_v52  ;;  %v1382_v60 = vmul.f32 0.70710677, %v1378_v55  ;;  %v574_v11 = vsub.f32 0.0, %v490_v52 }
 0x21e   : > { %1083 = vrcp.f32 %v504_v51  ;;  %v499_v61 = vmul.f32 0.3275911, %v493_v58  ;;  %v585_v15 = vmul.f32 1.442695, %v579_v6  ;;  %v591_v18 = vmul.f32 1.442695, %v582_v10 }
 0x21f   : > { %v502_v59 = vadd.f32 1.0, %v496_v57  ;;  %v494_v0 = vand.u32 2147483647, %v1382_v60  ;;  %v577_v19 = vsub.f32 0.0, %v493_v58  ;;  %v580_v22 = vmul.f32 %v574_v11, %v490_v52 }
 0x220   : > { %v505_v2 = vadd.f32 1.0, %v499_v61  ;;  %vm613_vm5 = vcmp.lt.f32.partialorder %v1376_v54, 0.0  ;;  %vm614_vm6 = vcmp.lt.f32.partialorder %v1382_v60, 0.0 }
 0x221   : > { %1085 = vrcp.f32 %v502_v59  ;;  %v500_v3 = vmul.f32 0.3275911, %v494_v0  ;;  %v578_v23 = vsub.f32 0.0, %v494_v0  ;;  %v583_v32 = vmul.f32 %v577_v19, %v493_v58 }
 0x222   : > { %1087 = vrcp.f32 %v505_v2  ;;  %v587_v37 = vmul.f32 1.442695, %v580_v22 }
 0x223   : > { %v506_v8 = vadd.f32 1.0, %v500_v3  ;;  %v584_v38 = vmul.f32 %v578_v23, %v494_v0  ;;  %v593_v50 = vmul.f32 1.442695, %v583_v32 }
 0x225   : > { %1089 = vrcp.f32 %v506_v8  ;;  %v595_v53 = vmul.f32 1.442695, %v584_v38 }
 0x226   : > { %v1080_v4 = vpop.eup %1079  ;;  %1091 = vpow2.f32 %v589_v5 }
 0x227   : > { %v521_v9 = vmul.f32 1.0614054, %v1080_v4  ;;  %1093 = vpow2.f32 %v585_v15 }
 0x228   : > { %1095 = vpow2.f32 %v591_v18 }
 0x229   : > { %v527_v12 = vadd.f32 -1.4531521, %v521_v9  ;;  %1097 = vpow2.f32 %v587_v37 }
 0x22a   : > { %v1082_v14 = vpop.eup %1081  ;;  %1099 = vpow2.f32 %v593_v50 }
 0x22b   : > { %v1084_v13 = vpop.eup %1083  ;;  %v533_v16 = vmul.f32 %v1080_v4, %v527_v12  ;;  %v519_v17 = vmul.f32 1.0614054, %v1082_v14  ;;  %1101 = vpow2.f32 %v595_v53 }
 0x22c   : > { %v522_v21 = vmul.f32 1.0614054, %v1084_v13 }
 0x22d   : > { %v539_v20 = vadd.f32 1.4214138, %v533_v16  ;;  %v525_v24 = vadd.f32 -1.4531521, %v519_v17 }
 0x22e   : > { %v528_v26 = vadd.f32 -1.4531521, %v522_v21  ;;  %v1385_v28 = vpop.eup %1085 }
 0x22f   : > { %v545_v7 = vmul.f32 %v1080_v4, %v539_v20  ;;  %v531_v29 = vmul.f32 %v1082_v14, %v525_v24  ;;  %v520_v34 = vmul.f32 1.0614054, %v1385_v28  ;;  %v1388_v41 = vpop.eup %1087 }
 0x230   : > { %v534_v33 = vmul.f32 %v1084_v13, %v528_v26  ;;  %v523_v49 = vmul.f32 1.0614054, %v1388_v41 }
 0x231   : > { %v551_v39 = vadd.f32 -0.28449672, %v545_v7  ;;  %v537_v40 = vadd.f32 1.4214138, %v531_v29  ;;  %v526_v44 = vadd.f32 -1.4531521, %v520_v34 }
 0x232   : > { %v540_v43 = vadd.f32 1.4214138, %v534_v33  ;;  %v1392_v56 = vpop.eup %1089  ;;  %v529_v59 = vadd.f32 -1.4531521, %v523_v49  ;;  %v479_v34 = vmul.f32 0.5, %v1349_v25  ;;  %v477_v25 = vmul.f32 0.5, %v1355_v30 }
 0x233   : > { %v557_v45 = vmul.f32 %v1080_v4, %v551_v39  ;;  %v543_v47 = vmul.f32 %v1082_v14, %v537_v40  ;;  %v532_v52 = vmul.f32 %v1385_v28, %v526_v44  ;;  %v524_v63 = vmul.f32 1.0614054, %v1392_v56  ;;  %v1092_v0 = vpop.eup %1091 }
 0x234   : > { %v546_v51 = vmul.f32 %v1084_v13, %v540_v43  ;;  %v535_v3 = vmul.f32 %v1388_v41, %v529_v59  ;;  %v1094_v17 = vpop.eup %1093 }
 0x235   : > { %v563_v57 = vadd.f32 0.2548296, %v557_v45  ;;  %v549_v58 = vadd.f32 -0.28449672, %v543_v47  ;;  %v538_v62 = vadd.f32 1.4214138, %v532_v52  ;;  %v1096_v21 = vpop.eup %1095 }
 0x236   : > { %v552_v61 = vadd.f32 -0.28449672, %v546_v51  ;;  %v530_v8 = vadd.f32 -1.4531521, %v524_v63  ;;  %v541_v11 = vadd.f32 1.4214138, %v535_v3  ;;  %v1098_v44 = vpop.eup %1097 }
 0x237   : > { %v569_v1 = vmul.f32 %v1080_v4, %v563_v57  ;;  %v555_v2 = vmul.f32 %v1082_v14, %v549_v58  ;;  %v544_v6 = vmul.f32 %v1385_v28, %v538_v62  ;;  %v1100_v57 = vpop.eup %1099 }
 0x238   : > { %v558_v5 = vmul.f32 %v1084_v13, %v552_v61  ;;  %v536_v16 = vmul.f32 %v1392_v56, %v530_v8  ;;  %v547_v19 = vmul.f32 %v1388_v41, %v541_v11  ;;  %v480_v61 = vmul.f32 0.5, %v1357_v31 }
 0x239   : > { %v599_v9 = vmul.f32 %v1092_v0, %v569_v1  ;;  %v561_v10 = vadd.f32 0.2548296, %v555_v2  ;;  %v550_v15 = vadd.f32 -0.28449672, %v544_v6  ;;  %v478_v6 = vmul.f32 0.5, %v1367_v42 }
 0x23a   : > { %v564_v12 = vadd.f32 0.2548296, %v558_v5  ;;  %v542_v20 = vadd.f32 1.4214138, %v536_v16  ;;  %v553_v7 = vadd.f32 -0.28449672, %v547_v19 }
 0x23b   : > { %v605_v18 = vsub.f32 1.0, %v599_v9  ;;  %v567_v4 = vmul.f32 %v1082_v14, %v561_v10  ;;  %v556_v23 = vmul.f32 %v1385_v28, %v550_v15  ;;  %v481_v11 = vmul.f32 0.5, %v1369_v46 }
 0x23c   : > { %v570_v22 = vmul.f32 %v1084_v13, %v564_v12  ;;  %v548_v33 = vmul.f32 %v1392_v56, %v542_v20  ;;  %v559_v38 = vmul.f32 %v1388_v41, %v553_v7  ;;  %v482_v42 = vmul.f32 0.5, %v1378_v55 }
 0x23d   : > { %v617_v24 = vsub.f32 0.0, %v605_v18  ;;  %v597_v26 = vmul.f32 %v1094_v17, %v567_v4  ;;  %v562_v32 = vadd.f32 0.2548296, %v556_v23 }
 0x23e   : > { %v600_v29 = vmul.f32 %v1096_v21, %v570_v22  ;;  %v554_v43 = vadd.f32 -0.28449672, %v548_v33  ;;  %v565_v27 = vadd.f32 0.2548296, %v559_v38 }
 0x23f   : > { %v623_v14 = vsel %vm611_vm1, %v617_v24, %v605_v18  ;;  %v603_v37 = vsub.f32 1.0, %v597_v26  ;;  %v568_v40 = vmul.f32 %v1385_v28, %v562_v32 }
 0x240   : > { %v629_v13 = vadd.f32 1.0, %v623_v14  ;;  %v606_v39 = vsub.f32 1.0, %v600_v29  ;;  %v560_v51 = vmul.f32 %v1392_v56, %v554_v43  ;;  %v571_v53 = vmul.f32 %v1388_v41, %v565_v27  ;;  %v1102_v41 = vpop.eup %1101 }
 0x241   : > { %v615_v45 = vsub.f32 0.0, %v603_v37  ;;  %v598_v50 = vmul.f32 %v1098_v44, %v568_v40 }
 0x242   : > { %v635_v47 = vmul.f32 %v629_v13, %v479_v34  ;;  %v618_v49 = vsub.f32 0.0, %v606_v39  ;;  %v566_v59 = vadd.f32 0.2548296, %v560_v51  ;;  %v601_v30 = vmul.f32 %v1100_v57, %v571_v53 }
 0x243   : > { %v621_v52 = vsel %vm609_vm2, %v615_v45, %v603_v37  ;;  %v604_v58 = vsub.f32 1.0, %v598_v50 }
 0x244   : > { %641 = vst [vmem:[%s1411_s18 + $0x10] sm:$0xff] %v635_v47  ;;  %v627_v35 = vadd.f32 1.0, %v621_v52  ;;  %v624_v28 = vsel %vm612_vm3, %v618_v49, %v606_v39  ;;  %v572_v36 = vmul.f32 %v1392_v56, %v566_v59  ;;  %v607_v2 = vsub.f32 1.0, %v601_v30 }
 0x245   : > { %v630_v62 = vadd.f32 1.0, %v624_v28  ;;  %v616_v0 = vsub.f32 0.0, %v604_v58 }
 0x246   : > { %v633_v63 = vmul.f32 %v627_v35, %v477_v25  ;;  %v602_v5 = vmul.f32 %v1102_v41, %v572_v36  ;;  %v619_v8 = vsub.f32 0.0, %v607_v2 }
 0x247   : > { %v636_v1 = vmul.f32 %v630_v62, %v480_v61  ;;  %v622_v3 = vsel %vm610_vm4, %v616_v0, %v604_v58 }
 0x248   : > { %639 = vst [vmem:[%s1411_s18] sm:$0xff] %v633_v63  ;;  %v628_v31 = vadd.f32 1.0, %v622_v3  ;;  %v608_v9 = vsub.f32 1.0, %v602_v5  ;;  %v625_v10 = vsel %vm613_vm5, %v619_v8, %v607_v2 }
 0x249   : > { %642 = vst [vmem:[%s1411_s18 + $0x18] sm:$0xff] %v636_v1  ;;  %v631_v48 = vadd.f32 1.0, %v625_v10 }
 0x24a   : > { %v634_v56 = vmul.f32 %v628_v31, %v478_v6  ;;  %v620_v12 = vsub.f32 0.0, %v608_v9 }
 0x24b   : > { %v637_v15 = vmul.f32 %v631_v48, %v481_v11 }
 0x24c   : > { %640 = vst [vmem:[%s1411_s18 + $0x8] sm:$0xff] %v634_v56  ;;  %v626_v16 = vsel %vm614_vm6, %v620_v12, %v608_v9 }
 0x24d   : > { %v632_v17 = vadd.f32 1.0, %v626_v16  ;;  %643 = vst [vmem:[%s1411_s18 + $0x20] sm:$0xff] %v637_v15  ;;  %651 = sbr.rel (!%p1252_p4) target bundleno = 647 (0x287), region = 44 }
 0x24f   : > { %v638_v18 = vmul.f32 %v632_v17, %v482_v42 }
 0x251   : > { %644 = vst [vmem:[%s1411_s18 + $0x28] sm:$0xff] %v638_v18 }
 0x252   : > { %s1497_s14 = smov (!%p654_p8, %s653_s14), 6 }
 0x253   : > { %s899_s23 = sshll.u32 %s1497_s14, 7 }
 0x254   : > { %p902_p9 = scmp.eq.s32.totalorder %s899_s23, 0 }
 0x255   : > { %1103 = sdivrem.u32 (!%p902_p9), %s1497_s14, 6 }
 0x256   : > { %662 = sbr.rel (%p902_p9) target bundleno = 647 (0x287), region = 48 }
 0x25e   : > { %s1440_s26 = spop.drf %1103 }
 0x25f   : > { %p903_p10 = scmp.le.s32.totalorder %s1440_s26, 0 }
 0x260   : > { %s1490_s21 = smov (!%p903_p10), %s1434_s20  ;;  %s1491_s27 = smov (!%p903_p10), %s1411_s18 }
 0x261   : > { %839 = sbr.rel (%p903_p10) target bundleno = 622 (0x26e), region = 124  ;;  %s1449_s24 = smov (!%p903_p10), 0  }
 0x262   : > { %s1451_s28 = smov (!%p903_p10), 0  }
 0x266 LB: >> { %v737_v46 = vld [vmem:[%s1169_s27] sm:$0xff]  ;;  %v739_v54 = vld [vmem:[%s1169_s27 + $0x8] sm:$0xff]  ;;  %v741_v55 = vld [vmem:[%s1169_s27 + $0x10] sm:$0xff]  ;;  %s749_s29 = sadd.s32 1, %s1173_s24  ;;  %s731_s28 = sadd.s32 1, %s1177_s28   ;;  %s1177_s28 = sphi %s1451_s28, %s731_s28   ;;  %s1173_s24 = sphi %s1449_s24, %s1492_s24   ;;  %s1169_s27 = sphi %s1491_s27, %s754_s27   ;;  %s1165_s21 = sphi %s1490_s21, %s755_s21  }
 0x267   : >> { %738 = vst [vmem:[%s1165_s21] sm:$0xff] %v737_v46  ;;  %740 = vst [vmem:[%s1165_s21 + $0x8] sm:$0xff] %v739_v54  ;;  %v743_v60 = vld [vmem:[%s1169_s27 + $0x18] sm:$0xff]  ;;  %v745_v4 = vld [vmem:[%s1169_s27 + $0x20] sm:$0xff]  ;;  %p750_p11 = scmp.ge.s32.totalorder %s749_s29, %s1440_s26  ;;  %p730_p12 = scmp.ge.s32.totalorder %s731_s28, %s1440_s26 }
 0x268   : >> { %742 = vst [vmem:[%s1165_s21 + $0x10] sm:$0xff] %v741_v55  ;;  %v747_v19 = vld [vmem:[%s1169_s27 + $0x28] sm:$0xff]  ;;  %744 = vst [vmem:[%s1165_s21 + $0x18] sm:$0xff] %v743_v60 }
 0x269   : >> { %746 = vst [vmem:[%s1165_s21 + $0x20] sm:$0xff] %v745_v4  ;;  %748 = vst [vmem:[%s1165_s21 + $0x28] sm:$0xff] %v747_v19  ;;  %s1499_s29 = smov (%p750_p11, %s749_s29), 0  ;;  %733 = sbr.rel (!%p730_p12) target bundleno = 614 (0x266), region = 130 }
 0x26a   : >> { %s752_s30 = smul.u32 48, %s1499_s29  ;;  %s1492_s24 = smov %s1499_s29 }
 0x26c   : >> { %s754_s27 = scalar_lea.vmem %s1411_s18, %s752_s30 [#allocation2]   ;;  %s755_s21 = scalar_lea.vmem %s1434_s20, %s752_s30  }
 0x26e PF: > { %1105 = sdivrem.u32 %s1497_s14, 6 }
 0x26f   : > { %s904_s6 = smul.u32 48, %s1440_s26 }
 0x271   : > { %s760_s7 = scalar_lea.vmem %s1411_s18, %s904_s6 [#allocation2]   ;;  %s762_s8 = scalar_lea.vmem %s1434_s20, %s904_s6  }
 0x277   : > { %s1106_s9 = spop.drf %1105 }
 0x278   : > { %p906_p13 = scmp.le.s32.totalorder %s1106_s9, 0 }
 0x279   : > { %s1179_s10 = smov (!%p906_p13), %s762_s8   ;;  %s1183_s11 = smov (!%p906_p13), %s760_s7  }
 0x27a   : > { %853 = sbr.rel (%p906_p13) target bundleno = 647 (0x287), region = 135  ;;  %s1187_s12 = smov (!%p906_p13), 0  }
 0x27b   : > { %s1191_s13 = smov (!%p906_p13), 0  }
 0x27f LB: >> { %v772_v21 = vld [vmem:[%s1185_s11] sm:$0xff]  ;;  %s774_s15 = sadd.s32 1, %s1189_s12  ;;  %s766_s13 = sadd.s32 1, %s1193_s13   ;;  %s1193_s13 = sphi %s1191_s13, %s766_s13   ;;  %s1189_s12 = sphi %s1187_s12, %s1188_s12   ;;  %s1185_s11 = sphi %s1183_s11, %s779_s11   ;;  %s1181_s10 = sphi %s1179_s10, %s780_s10  }
 0x280   : >> { %773 = vst [vmem:[%s1181_s10] sm:$0xff] %v772_v21  ;;  %p775_p0 = scmp.ge.s32.totalorder %s774_s15, %s1106_s9  ;;  %p765_p1 = scmp.ge.s32.totalorder %s766_s13, %s1106_s9 }
 0x282   : >> { %s1501_s15 = smov (%p775_p0, %s774_s15), 0  ;;  %768 = sbr.rel (!%p765_p1) target bundleno = 639 (0x27f), region = 141 }
 0x283   : >> { %s907_s18 = sshll.u32 %s1501_s15, 3  ;;  %s1188_s12 = smov %s1501_s15  }
 0x284   : >> { %s779_s11 = scalar_lea.vmem %s760_s7, %s907_s18 [#allocation2]   ;;  %s780_s10 = scalar_lea.vmem %s762_s8, %s907_s18  }
 0x287 PF: > { %p12_p2 = scmp.ge.s32.totalorder %s1242_s22, 4   ;;  %s1493_s18 = smov %s1157_s19 }
 0x288   : > { %s1494_s19 = smov %s1250_s25  ;;  %s1495_s20 = smov %s1242_s22 }
 0x289   :  { %14 = sbr.rel (!%p12_p2) target bundleno = 2 (0x2), region = 152 }

// kernel: _lambda_.6
= control target key start
LH: loop header
LB: loop body
LE: loop exit
PB: predicated region body
PF: predicated region fallthrough
CT: control target
= control target key end

     0   :  { %s671_s15 = smov 0   ;;  %s770_s0 = inlined_call_operand.vmem [shape: f32[12,128], index: 0, kind: input, shape index: {}]   ;;  %s771_s1 = inlined_call_operand.vmem [shape: f32[1,128], index: 1, kind: input, shape index: {}]   ;;  %s772_s2 = inlined_call_operand.vmem [shape: f32[1,128], index: 2, kind: input, shape index: {}]   ;;  %s773_s3 = inlined_call_operand.vmem [shape: bf16[128,384], index: 3, kind: input, shape index: {}]   ;;  %s774_s4 = inlined_call_operand.vmem [shape: f32[12,384], index: 4, kind: output, shape index: {}]  }
   0x1 LB: > { %s525_s16 = sadd.s32 4294967295, %s641_s15   ;;  %p529_p0 = scmp.ge.s32.totalorder %s641_s15, 1  ;;  %s641_s15 = sphi %s671_s15, %s14_s15  }
   0x2   : > { %p161_p1 = scmp.lt.s32.totalorder %s641_s15, 3 }
   0x4   : > { %p162_p2 = pnand %p529_p0, %p161_p1 }
   0x5   : > { %p186_p3 = scmp.lt.s32.totalorder (!%p162_p2), %s525_s16, 1 }
   0x6   : > { %165 = sbr.rel (%p162_p2) target bundleno = 522 (0x20a), region = 36 }
   0xb   : > { %s776_s16 = smov (!%p186_p3, %s525_s16), 1  ;;  %v601_v1 = vld [vmem:[%s773_s3 + $0xac] ss:$12 sps:$4 sm:$0xff]   ;;  %v603_v2 = vld [vmem:[%s773_s3 + $0xa8] ss:$12 sps:$4 sm:$0xff]   ;;  %v643_v3 = vmov 0.0  }
   0xc   : > { %s530_s17 = sshll.u32 %s776_s16, 3  ;;  %569 = vmatprep.subr.bf16.mxu1 %v643_v3  ;;  %v604_v4 = vld [vmem:[%s773_s3 + $0xb0] ss:$12 sps:$4 sm:$0xff]   ;;  %v605_v5 = vld [vmem:[%s773_s3 + $0x94] ss:$12 sps:$4 sm:$0xff]   ;;  %386 = vmatprep.subr.bf16.mxu0 %v601_v1  ;;  %v644_v22 = vmov 0  }
   0xd   : > { %s189_s20 = scalar_lea.vmem %s770_s0, %s530_s17  ;;  %387 = vmatpush1.bf16.msra.mxu0 %v603_v2  ;;  %570 = vmatpush3.bf16.msra.mxu1 %v604_v4  ;;  %v607_v6 = vld [vmem:[%s773_s3 + $0x90] ss:$12 sps:$4 sm:$0xff]   ;;  %v608_v7 = vld [vmem:[%s773_s3 + $0x98] ss:$12 sps:$4 sm:$0xff]   ;;  %v612_v14 = vld [vmem:[%s773_s3 + $0x80] ss:$12 sps:$4 sm:$0xff]  }
   0xe   : > { %v196_v0 = vld [vmem:[%s189_s20] sm:$0xff]  ;;  %388 = vmatprep.subr.bf16.mxu0 %v605_v5  ;;  %571 = vmatprep.subr.bf16.mxu1 %v643_v3  ;;  %v609_v12 = vld [vmem:[%s773_s3 + $0x7c] ss:$12 sps:$4 sm:$0xff]   ;;  %v617_v18 = vld [vmem:[%s773_s3 + $0x4c] ss:$12 sps:$4 sm:$0xff]   ;;  %vm645_vm0 = vmmov 0  }
   0xf   : > { %197 = vadd.xlane.f32.xlu0 %v196_v0  ;;  %v611_v13 = vld [vmem:[%s773_s3 + $0x78] ss:$12 sps:$4 sm:$0xff]   ;;  %v615_v16 = vld [vmem:[%s773_s3 + $0x60] ss:$12 sps:$4 sm:$0xff]   ;;  %v616_v17 = vld [vmem:[%s773_s3 + $0x68] ss:$12 sps:$4 sm:$0xff]   ;;  %418 = vmatprep.mubr.bf16.mxu0 %v644_v22 }
  0x10   : > { %v613_v15 = vld [vmem:[%s773_s3 + $0x64] ss:$12 sps:$4 sm:$0xff]   ;;  %v619_v19 = vld [vmem:[%s773_s3 + $0x48] ss:$12 sps:$4 sm:$0xff]   ;;  %585 = vmatprep.mubr.msk.bf16.mxu1 %vm645_vm0, %v643_v3  ;;  %v628_v27 = vld [vmem:[%s773_s3 + $0x20] ss:$12 sps:$4 sm:$0xff]  }
  0x11   : > { %389 = vmatpush1.bf16.msra.mxu0 %v607_v6  ;;  %572 = vmatpush3.bf16.msra.mxu1 %v608_v7  ;;  %v620_v20 = vld [vmem:[%s773_s3 + $0x50] ss:$12 sps:$4 sm:$0xff]   ;;  %v621_v21 = vld [vmem:[%s773_s3 + $0x34] ss:$12 sps:$4 sm:$0xff]   ;;  %v624_v24 = vld [vmem:[%s773_s3 + $0x38] ss:$12 sps:$4 sm:$0xff]  }
  0x12   : > { %573 = vmatprep.subr.bf16.mxu1 %v643_v3  ;;  %390 = vmatprep.subr.bf16.mxu0 %v609_v12  ;;  %v623_v23 = vld [vmem:[%s773_s3 + $0x30] ss:$12 sps:$4 sm:$0xff]   ;;  %v627_v26 = vld [vmem:[%s773_s3 + $0x18] ss:$12 sps:$4 sm:$0xff]   ;;  %v631_v29 = vld [vmem:[%s773_s3] ss:$12 sps:$4 sm:$0xff]  }
  0x13   : > { %v625_v25 = vld [vmem:[%s773_s3 + $0x1c] ss:$12 sps:$4 sm:$0xff]   ;;  %v629_v28 = vld [vmem:[%s773_s3 + $0x4] ss:$12 sps:$4 sm:$0xff]   ;;  %v532_v35 = vld [vmem:[%s771_s1] ss:$0 sm:$0xff] }
  0x14   : > { %v632_v30 = vld [vmem:[%s773_s3 + $0x8] ss:$12 sps:$4 sm:$0xff]   ;;  %v533_v37 = vld [vmem:[%s772_s2] ss:$0 sm:$0xff]  ;;  %s589_s25 = smul.u32 24, %s776_s16 }
  0x15   : > { %391 = vmatpush1.bf16.msra.mxu0 %v611_v13  ;;  %574 = vmatpush3.bf16.msra.mxu1 %v612_v14 }
  0x16   : > { %575 = vmatprep.subr.bf16.mxu1 %v643_v3  ;;  %392 = vmatprep.subr.bf16.mxu0 %v613_v15  ;;  %s194_s28 = scalar_lea.vmem %s774_s4, %s589_s25 }
  0x19   : > { %393 = vmatpush1.bf16.msra.mxu0 %v615_v16  ;;  %576 = vmatpush3.bf16.msra.mxu1 %v616_v17 }
  0x1a   : > { %394 = vmatprep.subr.bf16.mxu0 %v617_v18  ;;  %577 = vmatprep.subr.bf16.mxu1 %v643_v3 }
  0x1d   : > { %395 = vmatpush1.bf16.msra.mxu0 %v619_v19  ;;  %578 = vmatpush3.bf16.msra.mxu1 %v620_v20 }
  0x1e   : > { %396 = vmatprep.subr.bf16.mxu0 %v621_v21  ;;  %579 = vmatprep.subr.bf16.mxu1 %v643_v3 }
  0x21   : > { %397 = vmatpush1.bf16.msra.mxu0 %v623_v23  ;;  %580 = vmatpush3.bf16.msra.mxu1 %v624_v24 }
  0x22   : > { %398 = vmatprep.subr.bf16.mxu0 %v625_v25  ;;  %581 = vmatprep.subr.bf16.mxu1 %v643_v3 }
  0x25   : > { %399 = vmatpush1.bf16.msra.mxu0 %v627_v26  ;;  %582 = vmatpush3.bf16.msra.mxu1 %v628_v27 }
  0x26   : > { %400 = vmatprep.subr.bf16.mxu0 %v629_v28  ;;  %583 = vmatprep.subr.bf16.mxu1 %v643_v3 }
  0x29   : > { %401 = vmatpush1.bf16.msra.mxu0 %v631_v29  ;;  %584 = vmatpush3.bf16.msra.mxu1 %v632_v30 }
  0x98   : > { %v198_v8 = vpop.xlane.xlu0 %197 }
  0x99   : > { %v200_v9 = vmul.f32 0.0078125, %v198_v8 }
  0x9b   : > { %v201_v10 = vsub.f32 %v196_v0, %v200_v9 }
  0x9d   : > { %v202_v11 = vmul.f32 %v201_v10, %v201_v10 }
  0x9f   : > { %203 = vadd.xlane.f32.xlu0 %v202_v11 }
 0x128   : > { %v204_v31 = vpop.xlane.xlu0 %203 }
 0x129   : > { %v205_v32 = vmul.f32 0.0078125, %v204_v31 }
 0x12b   : > { %v206_v33 = vadd.f32 1e-05, %v205_v32 }
 0x12d   : > { %633 = vrsqrt.f32 %v206_v33 }
 0x13a   : > { %v634_v34 = vpop.eup %633 }
 0x13b   : > { %v208_v36 = vmul.f32 %v634_v34, %v201_v10 }
 0x13d   : > { %v216_v38 = vmul.f32 %v532_v35, %v208_v36 }
 0x13f   : > { %v224_v39 = vadd.f32 %v533_v37, %v216_v38 }
 0x141   : > { %v225_v40 = vpack.c.bf16 %v224_v39, %v224_v39 }
 0x143   : > { %419 = vmatmul.mubr.bf16.vlgmr.msra.gmra.mxu0 %v225_v40  ;;  %586 = vmatmul.mubr.bf16.vlgmr.msra.gmra.mxu1 %v225_v40 }
 0x203   : > { %v420_v41 = vpop.f32.mrf.mxu0  ;;  %v461_v42 = vpop.f32.mrf.mxu1 }
 0x204   : > { %467 = vst [vmem:[%s194_s28] sm:$0xff] %v420_v41  ;;  %469 = vst [vmem:[%s194_s28 + $0x10] sm:$0xff] %v461_v42 }
 0x205   : > { %v422_v43 = vpop.f32.mrf.mxu0  ;;  %v587_v44 = vpop.f32.mrf.mxu1 }
 0x206   : > { %468 = vst [vmem:[%s194_s28 + $0x8] sm:$0xff] %v422_v43 }
 0x207   : > { %v424_v45 = vpop.f32.mrf.mxu0  ;;  %v464_v46 = vpop.f32.mrf.mxu1 }
 0x209   : > { %v425_v47 = vpop.f32.mrf.mxu0  ;;  %v588_v48 = vpop.f32.mrf.mxu1 }
 0x20a PF: > { %s14_s15 = sadd.s32 1, %s641_s15  }
 0x20b   : > { %p11_p4 = scmp.ge.s32.totalorder %s14_s15, 4  }
 0x20d   :  { %13 = sbr.rel (!%p11_p4) target bundleno = 1 (0x1), region = 66 }

// kernel: _lambda_.7
= control target key start
LH: loop header
LB: loop body
LE: loop exit
PB: predicated region body
PF: predicated region fallthrough
CT: control target
= control target key end

     0   :  { %s556_s18 = smov 0   ;;  %s613_s0 = inlined_call_operand.vmem [shape: f32[12,128], index: 0, kind: input, shape index: {}]   ;;  %s614_s1 = inlined_call_operand.vmem [shape: f32[1,128], index: 1, kind: input, shape index: {}]   ;;  %s615_s2 = inlined_call_operand.vmem [shape: f32[1,128], index: 2, kind: input, shape index: {}]   ;;  %s616_s3 = inlined_call_operand.vmem [shape: bf16[128,128], index: 3, kind: input, shape index: {}]   ;;  %s617_s4 = inlined_call_operand.vmem [shape: f32[1,128], index: 4, kind: input, shape index: {}]   ;;  %s618_s5 = inlined_call_operand.vmem [shape: f32[12,128], index: 5, kind: output, shape index: {}]  }
   0x1 LB: > { %s443_s19 = sadd.s32 4294967295, %s522_s18   ;;  %p447_p0 = scmp.ge.s32.totalorder %s522_s18, 1  ;;  %s522_s18 = sphi %s556_s18, %s15_s18  }
   0x2   : > { %p186_p1 = scmp.lt.s32.totalorder %s522_s18, 3 }
   0x4   : > { %p187_p2 = pnand %p447_p0, %p186_p1 }
   0x5   : > { %p212_p3 = scmp.lt.s32.totalorder (!%p187_p2), %s443_s19, 1 }
   0x6   : > { %190 = sbr.rel (%p187_p2) target bundleno = 570 (0x23a), region = 40 }
   0xb   : > { %s620_s19 = smov (!%p212_p3, %s443_s19), 1  ;;  %v502_v1 = vld [vmem:[%s616_s3 + $0x38] sm:$0xff]   ;;  %v524_v2 = vmov 0.0   ;;  %v503_v3 = vld [vmem:[%s616_s3 + $0x30] sm:$0xff]   ;;  %v504_v8 = vld [vmem:[%s616_s3 + $0x28] sm:$0xff]   ;;  %vm525_vm0 = vmmov 0  }
   0xc   : > { %s448_s20 = sshll.u32 %s620_s19, 3  ;;  %472 = vmatprep.subr.bf16.mxu0 %v524_v2  ;;  %v505_v9 = vld [vmem:[%s616_s3 + $0x20] sm:$0xff]   ;;  %488 = vmatprep.mubr.msk.bf16.mxu0 %vm525_vm0, %v524_v2  ;;  %v506_v10 = vld [vmem:[%s616_s3 + $0x18] sm:$0xff]   ;;  %v507_v11 = vld [vmem:[%s616_s3 + $0x10] sm:$0xff]  }
   0xd   : > { %s215_s23 = scalar_lea.vmem %s613_s0, %s448_s20  ;;  %473 = vmatpush3.bf16.msra.mxu0 %v502_v1  ;;  %v508_v12 = vld [vmem:[%s616_s3 + $0x8] sm:$0xff]   ;;  %v509_v13 = vld [vmem:[%s616_s3] sm:$0xff]   ;;  %s219_s26 = scalar_lea.vmem %s618_s5, %s448_s20 }
   0xe   : > { %v221_v0 = vld [vmem:[%s215_s23] sm:$0xff]  ;;  %474 = vmatprep.subr.bf16.mxu0 %v524_v2 }
   0xf   : > { %222 = vadd.xlane.f32.xlu0 %v221_v0  ;;  %v450_v18 = vld [vmem:[%s614_s1] ss:$0 sm:$0xff] }
  0x10   : > { %v451_v20 = vld [vmem:[%s615_s2] ss:$0 sm:$0xff] }
  0x11   : > { %475 = vmatpush3.bf16.msra.mxu0 %v503_v3  ;;  %v452_v24 = vld [vmem:[%s617_s4] ss:$0 sm:$0xff] }
  0x12   : > { %476 = vmatprep.subr.bf16.mxu0 %v524_v2 }
  0x15   : > { %477 = vmatpush3.bf16.msra.mxu0 %v504_v8 }
  0x16   : > { %478 = vmatprep.subr.bf16.mxu0 %v524_v2 }
  0x19   : > { %479 = vmatpush3.bf16.msra.mxu0 %v505_v9 }
  0x1a   : > { %480 = vmatprep.subr.bf16.mxu0 %v524_v2 }
  0x1d   : > { %481 = vmatpush3.bf16.msra.mxu0 %v506_v10 }
  0x1e   : > { %482 = vmatprep.subr.bf16.mxu0 %v524_v2 }
  0x21   : > { %483 = vmatpush3.bf16.msra.mxu0 %v507_v11 }
  0x22   : > { %484 = vmatprep.subr.bf16.mxu0 %v524_v2 }
  0x25   : > { %485 = vmatpush3.bf16.msra.mxu0 %v508_v12 }
  0x26   : > { %486 = vmatprep.subr.bf16.mxu0 %v524_v2 }
  0x29   : > { %487 = vmatpush3.bf16.msra.mxu0 %v509_v13 }
  0x98   : > { %v223_v4 = vpop.xlane.xlu0 %222 }
  0x99   : > { %v225_v5 = vmul.f32 0.0078125, %v223_v4 }
  0x9b   : > { %v226_v6 = vsub.f32 %v221_v0, %v225_v5 }
  0x9d   : > { %v227_v7 = vmul.f32 %v226_v6, %v226_v6 }
  0x9f   : > { %228 = vadd.xlane.f32.xlu0 %v227_v7 }
 0x128   : > { %v229_v14 = vpop.xlane.xlu0 %228 }
 0x129   : > { %v230_v15 = vmul.f32 0.0078125, %v229_v14 }
 0x12b   : > { %v231_v16 = vadd.f32 1e-05, %v230_v15 }
 0x12d   : > { %510 = vrsqrt.f32 %v231_v16 }
 0x13a   : > { %v511_v17 = vpop.eup %510 }
 0x13b   : > { %v233_v19 = vmul.f32 %v511_v17, %v226_v6 }
 0x13d   : > { %v241_v21 = vmul.f32 %v450_v18, %v233_v19 }
 0x13f   : > { %v249_v22 = vadd.f32 %v451_v20, %v241_v21 }
 0x141   : > { %v250_v23 = vpack.c.bf16 %v249_v22, %v249_v22 }
 0x143   : > { %489 = vmatmul.mubr.bf16.vlgmr.msra.gmra.mxu0 %v250_v23 }
 0x203   : > { %v356_v25 = vpop.f32.mrf.mxu0 }
 0x204   : > { %v357_v26 = vadd.f32 %v452_v24, %v356_v25 }
 0x205   : > { %v490_v27 = vpop.f32.mrf.mxu0 }
 0x206   : > { %v363_v28 = vmul.f32 0.70710677, %v357_v26  ;;  %v362_v52 = vmul.f32 0.5, %v357_v26 }
 0x207   : > { %v359_v29 = vpop.f32.mrf.mxu0 }
 0x208   : > { %v364_v30 = vand.u32 2147483647, %v363_v28  ;;  %vm384_vm1 = vcmp.lt.f32.partialorder %v363_v28, 0.0 }
 0x209   : > { %v491_v31 = vpop.f32.mrf.mxu0 }
 0x20a   : > { %v365_v32 = vmul.f32 0.3275911, %v364_v30  ;;  %v378_v34 = vsub.f32 0.0, %v364_v30 }
 0x20c   : > { %v366_v33 = vadd.f32 1.0, %v365_v32  ;;  %v379_v35 = vmul.f32 %v378_v34, %v364_v30 }
 0x20e   : > { %512 = vrcp.f32 %v366_v33  ;;  %v380_v38 = vmul.f32 1.442695, %v379_v35 }
 0x210   : > { %514 = vpow2.f32 %v380_v38 }
 0x21b   : > { %v513_v36 = vpop.eup %512 }
 0x21c   : > { %v369_v37 = vmul.f32 1.0614054, %v513_v36 }
 0x21d   : > { %v515_v47 = vpop.eup %514 }
 0x21e   : > { %v370_v39 = vadd.f32 -1.4531521, %v369_v37 }
 0x220   : > { %v371_v40 = vmul.f32 %v513_v36, %v370_v39 }
 0x222   : > { %v372_v41 = vadd.f32 1.4214138, %v371_v40 }
 0x224   : > { %v373_v42 = vmul.f32 %v513_v36, %v372_v41 }
 0x226   : > { %v374_v43 = vadd.f32 -0.28449672, %v373_v42 }
 0x228   : > { %v375_v44 = vmul.f32 %v513_v36, %v374_v43 }
 0x22a   : > { %v376_v45 = vadd.f32 0.2548296, %v375_v44 }
 0x22c   : > { %v377_v46 = vmul.f32 %v513_v36, %v376_v45 }
 0x22e   : > { %v382_v48 = vmul.f32 %v515_v47, %v377_v46 }
 0x230   : > { %v383_v49 = vsub.f32 1.0, %v382_v48 }
 0x232   : > { %v385_v50 = vsub.f32 0.0, %v383_v49 }
 0x234   : > { %v386_v51 = vsel %vm384_vm1, %v385_v50, %v383_v49 }
 0x235   : > { %v387_v53 = vadd.f32 1.0, %v386_v51 }
 0x237   : > { %v388_v54 = vmul.f32 %v387_v53, %v362_v52 }
 0x239   : > { %389 = vst [vmem:[%s219_s26] sm:$0xff] %v388_v54 }
 0x23a PF: > { %s15_s18 = sadd.s32 1, %s522_s18  }
 0x23b   : > { %p12_p4 = scmp.ge.s32.totalorder %s15_s18, 4  }
 0x23d   :  { %14 = sbr.rel (!%p12_p4) target bundleno = 1 (0x1), region = 70 }

// kernel: _lambda_.11
= control target key start
LH: loop header
LB: loop body
LE: loop exit
PB: predicated region body
PF: predicated region fallthrough
CT: control target
= control target key end

     0   :  { %vm19_vm0 = vcmask 1043456   ;;  %v394_v3 = vmov 0.0   ;;  %v395_v24 = vmov 0   ;;  %vm396_vm1 = vmmov 0   ;;  %s511_s0 = inlined_call_operand.vmem [shape: f32[4,128], index: 0, kind: input, shape index: {}]   ;;  %s512_s3 = inlined_call_operand.vmem [shape: bf16[128,384], index: 3, kind: input, shape index: {}]   ;;  %s513_s1 = inlined_call_operand.vmem [shape: f32[1,128], index: 1, kind: input, shape index: {}]   ;;  %s514_s2 = inlined_call_operand.vmem [shape: f32[1,128], index: 2, kind: input, shape index: {}]   ;;  %s515_s4 = inlined_call_operand.vmem [shape: f32[4,384], index: 4, kind: output, shape index: {}]  }
   0x1   :  { %v18_v0 = vld [vmem:[%s511_s0] sm:$0xf]  ;;  %v360_v2 = vld [vmem:[%s512_s3 + $0xac] ss:$12 sps:$4 sm:$0xff]   ;;  %337 = vmatprep.subr.bf16.mxu1 %v394_v3  ;;  %v362_v4 = vld [vmem:[%s512_s3 + $0xa8] ss:$12 sps:$4 sm:$0xff]   ;;  %243 = vmatprep.mubr.bf16.mxu0 %v395_v24 }
   0x2   :  { %v20_v1 = vsel %vm19_vm0, %v18_v0, 0.0  ;;  %211 = vmatprep.subr.bf16.mxu0 %v360_v2  ;;  %v363_v5 = vld [vmem:[%s512_s3 + $0xb0] ss:$12 sps:$4 sm:$0xff]   ;;  %v364_v6 = vld [vmem:[%s512_s3 + $0x94] ss:$12 sps:$4 sm:$0xff]   ;;  %353 = vmatprep.mubr.msk.bf16.mxu1 %vm396_vm1, %v394_v3 }
   0x3   :  { %21 = vadd.xlane.f32.xlu0 %v20_v1  ;;  %212 = vmatpush1.bf16.msra.mxu0 %v362_v4  ;;  %v366_v7 = vld [vmem:[%s512_s3 + $0x90] ss:$12 sps:$4 sm:$0xff]   ;;  %v367_v8 = vld [vmem:[%s512_s3 + $0x98] ss:$12 sps:$4 sm:$0xff]   ;;  %v371_v16 = vld [vmem:[%s512_s3 + $0x80] ss:$12 sps:$4 sm:$0xff]  }
   0x4   :  { %338 = vmatpush3.bf16.msra.mxu1 %v363_v5  ;;  %213 = vmatprep.subr.bf16.mxu0 %v364_v6  ;;  %v368_v14 = vld [vmem:[%s512_s3 + $0x7c] ss:$12 sps:$4 sm:$0xff]   ;;  %v370_v15 = vld [vmem:[%s512_s3 + $0x78] ss:$12 sps:$4 sm:$0xff]   ;;  %v374_v18 = vld [vmem:[%s512_s3 + $0x60] ss:$12 sps:$4 sm:$0xff]  }
   0x5   :  { %339 = vmatprep.subr.bf16.mxu1 %v394_v3  ;;  %v372_v17 = vld [vmem:[%s512_s3 + $0x64] ss:$12 sps:$4 sm:$0xff]   ;;  %v375_v19 = vld [vmem:[%s512_s3 + $0x68] ss:$12 sps:$4 sm:$0xff]   ;;  %v376_v20 = vld [vmem:[%s512_s3 + $0x4c] ss:$12 sps:$4 sm:$0xff]  }
   0x6   :  { %v378_v21 = vld [vmem:[%s512_s3 + $0x48] ss:$12 sps:$4 sm:$0xff]   ;;  %v379_v22 = vld [vmem:[%s512_s3 + $0x50] ss:$12 sps:$4 sm:$0xff]   ;;  %v383_v26 = vld [vmem:[%s512_s3 + $0x38] ss:$12 sps:$4 sm:$0xff]  }
   0x7   :  { %214 = vmatpush1.bf16.msra.mxu0 %v366_v7  ;;  %v380_v23 = vld [vmem:[%s512_s3 + $0x34] ss:$12 sps:$4 sm:$0xff]   ;;  %v382_v25 = vld [vmem:[%s512_s3 + $0x30] ss:$12 sps:$4 sm:$0xff]   ;;  %v386_v28 = vld [vmem:[%s512_s3 + $0x18] ss:$12 sps:$4 sm:$0xff]  }
   0x8   :  { %340 = vmatpush3.bf16.msra.mxu1 %v367_v8  ;;  %215 = vmatprep.subr.bf16.mxu0 %v368_v14  ;;  %v384_v27 = vld [vmem:[%s512_s3 + $0x1c] ss:$12 sps:$4 sm:$0xff]   ;;  %v387_v29 = vld [vmem:[%s512_s3 + $0x20] ss:$12 sps:$4 sm:$0xff]   ;;  %v388_v30 = vld [vmem:[%s512_s3 + $0x4] ss:$12 sps:$4 sm:$0xff]  }
   0x9   :  { %341 = vmatprep.subr.bf16.mxu1 %v394_v3  ;;  %v390_v31 = vld [vmem:[%s512_s3] ss:$12 sps:$4 sm:$0xff]   ;;  %v391_v32 = vld [vmem:[%s512_s3 + $0x8] ss:$12 sps:$4 sm:$0xff]  }
   0xa   :  { %v302_v37 = vld [vmem:[%s513_s1] ss:$0 sm:$0xff] }
   0xb   :  { %216 = vmatpush1.bf16.msra.mxu0 %v370_v15  ;;  %v303_v39 = vld [vmem:[%s514_s2] ss:$0 sm:$0xff] }
   0xc   :  { %342 = vmatpush3.bf16.msra.mxu1 %v371_v16  ;;  %217 = vmatprep.subr.bf16.mxu0 %v372_v17 }
   0xd   :  { %343 = vmatprep.subr.bf16.mxu1 %v394_v3 }
   0xf   :  { %218 = vmatpush1.bf16.msra.mxu0 %v374_v18 }
  0x10   :  { %344 = vmatpush3.bf16.msra.mxu1 %v375_v19  ;;  %219 = vmatprep.subr.bf16.mxu0 %v376_v20 }
  0x11   :  { %345 = vmatprep.subr.bf16.mxu1 %v394_v3 }
  0x13   :  { %220 = vmatpush1.bf16.msra.mxu0 %v378_v21 }
  0x14   :  { %346 = vmatpush3.bf16.msra.mxu1 %v379_v22  ;;  %221 = vmatprep.subr.bf16.mxu0 %v380_v23 }
  0x15   :  { %347 = vmatprep.subr.bf16.mxu1 %v394_v3 }
  0x17   :  { %222 = vmatpush1.bf16.msra.mxu0 %v382_v25 }
  0x18   :  { %348 = vmatpush3.bf16.msra.mxu1 %v383_v26  ;;  %223 = vmatprep.subr.bf16.mxu0 %v384_v27 }
  0x19   :  { %349 = vmatprep.subr.bf16.mxu1 %v394_v3 }
  0x1b   :  { %224 = vmatpush1.bf16.msra.mxu0 %v386_v28 }
  0x1c   :  { %350 = vmatpush3.bf16.msra.mxu1 %v387_v29  ;;  %225 = vmatprep.subr.bf16.mxu0 %v388_v30 }
  0x1d   :  { %351 = vmatprep.subr.bf16.mxu1 %v394_v3 }
  0x1f   :  { %226 = vmatpush1.bf16.msra.mxu0 %v390_v31 }
  0x20   :  { %352 = vmatpush3.bf16.msra.mxu1 %v391_v32 }
  0x8c   :  { %v22_v9 = vpop.xlane.xlu0 %21 }
  0x8d   :  { %v24_v10 = vmul.f32 0.0078125, %v22_v9 }
  0x8f   :  { %v25_v11 = vsub.f32 %v18_v0, %v24_v10 }
  0x91   :  { %v26_v12 = vmul.f32 %v25_v11, %v25_v11 }
  0x93   :  { %v27_v13 = vsel %vm19_vm0, %v26_v12, 0.0 }
  0x94   :  { %28 = vadd.xlane.f32.xlu0 %v27_v13 }
 0x11d   :  { %v29_v33 = vpop.xlane.xlu0 %28 }
 0x11e   :  { %v30_v34 = vmul.f32 0.0078125, %v29_v33 }
 0x120   :  { %v31_v35 = vadd.f32 1e-05, %v30_v34 }
 0x122   :  { %392 = vrsqrt.f32 %v31_v35 }
 0x12f   :  { %v393_v36 = vpop.eup %392 }
 0x130   :  { %v33_v38 = vmul.f32 %v393_v36, %v25_v11 }
 0x132   :  { %v41_v40 = vmul.f32 %v302_v37, %v33_v38 }
 0x134   :  { %v49_v41 = vadd.f32 %v303_v39, %v41_v40 }
 0x136   :  { %v50_v42 = vpack.c.bf16 %v49_v41, %v49_v41 }
 0x138   :  { %244 = vmatmul.mubr.bf16.vlgmr.msra.gmra.mxu0 %v50_v42  ;;  %354 = vmatmul.mubr.bf16.vlgmr.msra.gmra.mxu1 %v50_v42 }
 0x1f8   :  { %v245_v43 = vpop.f32.mrf.mxu0  ;;  %v286_v44 = vpop.f32.mrf.mxu1 }
 0x1f9   :  { %297 = vst [vmem:[%s515_s4 + $0x8] sm:$0xf] %v286_v44 }
 0x1fa   :  { %v247_v45 = vpop.f32.mrf.mxu0  ;;  %v355_v46 = vpop.f32.mrf.mxu1 }
 0x1fb   :  { %v294_v47 = vcombine.low %v245_v43, %v247_v45 }
 0x1fc   :  { %v249_v48 = vpop.f32.mrf.mxu0  ;;  %v289_v49 = vpop.f32.mrf.mxu1 }
 0x1fd   :  { %296 = vst [vmem:[%s515_s4] sm:$0xff] %v294_v47 }
 0x1fe   :  { %v250_v50 = vpop.f32.mrf.mxu0  ;;  %v356_v51 = vpop.f32.mrf.mxu1 }

</bundles_post_ra>
